<compile_context>
chip_gen: v6e
topology: v6e:2x2x1
jax: 0.10.0
libtpu: 0.0.40
codegen_flags: <defaults>
</compile_context>

<pallas_src>
import functools
import math

import jax
import jax.numpy as jnp
from jax.experimental import pallas as pl
from jax.experimental.pallas import tpu as pltpu


# ----------------------------- fused layer kernel -----------------------------

def _decoder_layer_kernel(x_ref, enc_ref, tmask_ref, smask_ref,
                          wqkv_s_ref, wo_s_ref, bo_s_ref, n0g_ref, n0b_ref,
                          wq_c_ref, wkv_c_ref, wo_c_ref, bo_c_ref, n1g_ref, n1b_ref,
                          ffw1_ref, ffb1_ref, ffw2_ref, ffb2_ref, n2g_ref, n2b_ref,
                          o_ref, *, heads, scale):
    """One full decoder layer for one batch element, fully resident in VMEM."""
    f32 = jnp.float32
    E = x_ref.shape[-1]
    hd = E // heads

    x = x_ref[0].astype(f32)        # [Lq, E]
    enc = enc_ref[0].astype(f32)    # [Lk, E]
    tmask = tmask_ref[0]            # [Lq, Lq]
    smask = smask_ref[0]            # [Lq, Lk]

    def layer_norm(v, g_ref, b_ref):
        mu = jnp.mean(v, axis=-1, keepdims=True)
        var = jnp.mean((v - mu) * (v - mu), axis=-1, keepdims=True)
        vn = (v - mu) * jax.lax.rsqrt(var + 1e-5)
        return vn * g_ref[...].astype(f32) + b_ref[...].astype(f32)

    def mha(q, k, v, mask):
        # q: [Lq, E] (heads packed along lanes), k/v: [Lk, E], mask: [Lq, Lk]
        qs = q * f32(scale)          # fold 1/sqrt(embed_size) into Q once
        outs = []
        for h in range(heads):       # static unroll; tiny per-head tiles
            sl = slice(h * hd, (h + 1) * hd)
            s = jax.lax.dot_general(qs[:, sl], k[:, sl],
                                    (((1,), (1,)), ((), ())),
                                    preferred_element_type=f32)
            s = jnp.where(mask == 0, f32(-1e20), s)
            s = s - jnp.max(s, axis=-1, keepdims=True)
            p = jnp.exp(s)
            p = p / jnp.sum(p, axis=-1, keepdims=True)
            outs.append(jnp.dot(p, v[:, sl], preferred_element_type=f32))
        return jnp.concatenate(outs, axis=-1)   # [Lq, E]

    # ---- self-attention + add & norm (dropout = identity) ----
    qkv = jnp.dot(x, wqkv_s_ref[...].astype(f32), preferred_element_type=f32)
    att = mha(qkv[:, :E], qkv[:, E:2 * E], qkv[:, 2 * E:3 * E], tmask)
    att = jnp.dot(att, wo_s_ref[...].astype(f32),
                  preferred_element_type=f32) + bo_s_ref[...].astype(f32)
    query = layer_norm(att + x, n0g_ref, n0b_ref)

    # ---- cross-attention (q: decoder, k/v: encoder) + add & norm ----
    qc = jnp.dot(query, wq_c_ref[...].astype(f32), preferred_element_type=f32)
    kv = jnp.dot(enc, wkv_c_ref[...].astype(f32), preferred_element_type=f32)
    attc = mha(qc, kv[:, :E], kv[:, E:2 * E], smask)
    attc = jnp.dot(attc, wo_c_ref[...].astype(f32),
                   preferred_element_type=f32) + bo_c_ref[...].astype(f32)
    xc = layer_norm(attc + query, n1g_ref, n1b_ref)

    # ---- feed-forward + add & norm ----
    h = jnp.dot(xc, ffw1_ref[...].astype(f32),
                preferred_element_type=f32) + ffb1_ref[...].astype(f32)
    h = jnp.maximum(h, 0.0)
    ff = jnp.dot(h, ffw2_ref[...].astype(f32),
                 preferred_element_type=f32) + ffb2_ref[...].astype(f32)
    out = layer_norm(ff + xc, n2g_ref, n2b_ref)

    o_ref[0] = out.astype(o_ref.dtype)


def decoder_layer(lp, x, enc, tgt_mask, src_mask, heads, scale):
    N, Lq, E = x.shape
    Lk = enc.shape[1]
    sa, ca = lp["self_attn"], lp["cross_attn"]

    def w2(arr):
        r, c = arr.shape
        return pl.BlockSpec((r, c), lambda n: (0, 0))

    in_specs = [
        pl.BlockSpec((1, Lq, E), lambda n: (n, 0, 0)),    # x
        pl.BlockSpec((1, Lk, E), lambda n: (n, 0, 0)),    # enc_out
        pl.BlockSpec((1, Lq, Lq), lambda n: (n, 0, 0)),   # target mask
        pl.BlockSpec((1, Lq, Lk), lambda n: (n, 0, 0)),   # source mask
        w2(sa["w_qkv"]), w2(sa["wo"]), w2(sa["bo"]),
        w2(lp["norm_g"]), w2(lp["norm_b"]),
        w2(ca["w_q"]), w2(ca["w_kv"]), w2(ca["wo"]), w2(ca["bo"]),
        w2(lp["norm1_g"]), w2(lp["norm1_b"]),
        w2(lp["ff_w1"]), w2(lp["ff_b1"]), w2(lp["ff_w2"]), w2(lp["ff_b2"]),
        w2(lp["norm2_g"]), w2(lp["norm2_b"]),
    ]
    operands = (x, enc, tgt_mask, src_mask,
                sa["w_qkv"], sa["wo"], sa["bo"], lp["norm_g"], lp["norm_b"],
                ca["w_q"], ca["w_kv"], ca["wo"], ca["bo"],
                lp["norm1_g"], lp["norm1_b"],
                lp["ff_w1"], lp["ff_b1"], lp["ff_w2"], lp["ff_b2"],
                lp["norm2_g"], lp["norm2_b"])

    return pl.pallas_call(
        functools.partial(_decoder_layer_kernel, heads=heads, scale=scale),
        out_shape=jax.ShapeDtypeStruct((N, Lq, E), x.dtype),
        grid=(N,),
        in_specs=in_specs,
        out_specs=pl.BlockSpec((1, Lq, E), lambda n: (n, 0, 0)),
        compiler_params=pltpu.CompilerParams(dimension_semantics=("parallel",)),
    )(*operands)


# ----------------------------- final projection -----------------------------

def _fc_kernel(x_ref, w_ref, b_ref, o_ref):
    y = jnp.dot(x_ref[...].astype(jnp.float32), w_ref[...].astype(jnp.float32),
                preferred_element_type=jnp.float32) + b_ref[...].astype(jnp.float32)
    o_ref[...] = y.astype(o_ref.dtype)


def final_projection(x2d, w_pad, b_pad):
    """x2d: [M, E] @ w_pad: [E, Vp] (Vp = vocab padded to 128 -> lane-dense store)."""
    M, K = x2d.shape
    Kp, Np = w_pad.shape
    return pl.pallas_call(
        _fc_kernel,
        out_shape=jax.ShapeDtypeStruct((M, Np), x2d.dtype),
        grid=(1,),
        in_specs=[pl.BlockSpec((M, K), lambda i: (0, 0)),
                  pl.BlockSpec((Kp, Np), lambda i: (0, 0)),
                  pl.BlockSpec((1, Np), lambda i: (0, 0))],
        out_specs=pl.BlockSpec((M, Np), lambda i: (0, 0)),
        compiler_params=pltpu.CompilerParams(dimension_semantics=("arbitrary",)),
    )(x2d, w_pad, b_pad)


# ------------------------------ forward pass ------------------------------

def decoder_forward(params, X, enc_out, src_mask, target_mask,
                    embed_size, heads, vocab):
    N, seq_len = X.shape
    src_len = enc_out.shape[1]
    positions = jnp.arange(seq_len)
    # TODO(synk): embedding gather kept in plain JAX (tiny; no Pallas gather needed).
    word = jnp.take(params["word_embed"], X, axis=0)         # [N, L, E]
    pos = jnp.take(params["pos_embed"], positions, axis=0)   # [L, E]
    x = word + pos[None, :, :]                               # dropout = identity

    # Head dim of the reference masks is size 1 -> collapse to per-batch [Lq, Lk].
    tgt_m = jnp.broadcast_to(target_mask, (N, 1, seq_len, seq_len)
                             ).reshape(N, seq_len, seq_len).astype(jnp.float32)
    src_m = jnp.broadcast_to(src_mask, (N, 1, seq_len, src_len)
                             ).reshape(N, seq_len, src_len).astype(jnp.float32)

    scale = 1.0 / math.sqrt(embed_size)
    for lp in params["layers"]:
        x = decoder_layer(lp, x, enc_out, tgt_m, src_m, heads, scale)

    out = final_projection(x.reshape(N * seq_len, embed_size),
                           params["fc_w_pad"], params["fc_b_pad"])
    return out[:, :vocab].reshape(N, seq_len, vocab)


# ------------------------------ param init ------------------------------

def init_params(key, vocab, embed_size, num_layers, heads, forward_expansion, max_len):
    hd = embed_size // heads
    eye_h = jnp.eye(heads, dtype=jnp.float32)

    def nrm(k, shape, scale=0.02):
        return (scale * jax.random.normal(k, shape)).astype(jnp.float32)

    def attn_fused(k):
        # Per-head (hd x hd) weights shared across heads -> block-diagonal [E, E]
        # forms, concatenated into fused Q/K/V matrices ONCE at init.
        ks = jax.random.split(k, 4)
        wq = jnp.kron(eye_h, nrm(ks[0], (hd, hd)))
        wk = jnp.kron(eye_h, nrm(ks[1], (hd, hd)))
        wv = jnp.kron(eye_h, nrm(ks[2], (hd, hd)))
        return {
            "w_qkv": jnp.concatenate([wq, wk, wv], axis=1),   # [E, 3E] (self-attn)
            "w_q": wq,                                        # [E, E]  (cross q)
            "w_kv": jnp.concatenate([wk, wv], axis=1),        # [E, 2E] (cross k,v)
            "wo": nrm(ks[3], (embed_size, embed_size)),
            "bo": jnp.zeros((1, embed_size), jnp.float32),
        }

    keys = jax.random.split(key, 4 + num_layers)
    Vp = ((vocab + 127) // 128) * 128
    fc_w = nrm(keys[2], (embed_size, vocab))
    params = {
        "word_embed": nrm(keys[0], (vocab, embed_size)),
        "pos_embed": nrm(keys[1], (max_len, embed_size)),
        "fc_w_pad": jnp.zeros((embed_size, Vp), jnp.float32).at[:, :vocab].set(fc_w),
        "fc_b_pad": jnp.zeros((1, Vp), jnp.float32),
        "layers": [],
    }

    hidden = forward_expansion * embed_size
    ones_e = jnp.ones((1, embed_size), jnp.float32)
    zeros_e = jnp.zeros((1, embed_size), jnp.float32)
    for li in range(num_layers):
        ks = jax.random.split(keys[4 + li], 4)
        params["layers"].append({
            "self_attn": attn_fused(ks[0]),
            "norm_g": ones_e, "norm_b": zeros_e,
            "cross_attn": attn_fused(ks[1]),
            "norm1_g": ones_e, "norm1_b": zeros_e,
            "ff_w1": nrm(ks[2], (embed_size, hidden)),
            "ff_b1": jnp.zeros((1, hidden), jnp.float32),
            "ff_w2": nrm(ks[3], (hidden, embed_size)),
            "ff_b2": zeros_e,
            "norm2_g": ones_e, "norm2_b": zeros_e,
        })
    return params


# --------------------------------- main ---------------------------------

if __name__ == "__main__":
    vocab, embed_size, num_layers, heads = 50, 32, 2, 4
    forward_expansion, max_len = 4, 16
    N, tgt_len, src_len = 2, 8, 8

    root = jax.random.PRNGKey(0)
    k_par, k_x, k_enc = jax.random.split(root, 3)

    params = init_params(k_par, vocab, embed_size, num_layers, heads,
                         forward_expansion, max_len)

    X = jax.random.randint(k_x, (N, tgt_len), 0, vocab, dtype=jnp.int32)
    enc_out = jax.random.normal(k_enc, (N, src_len, embed_size), jnp.float32)
    src_mask = jnp.ones((N, 1, 1, src_len), jnp.float32)
    target_mask = jnp.tril(jnp.ones((tgt_len, tgt_len), jnp.float32))[None, None, :, :]
    target_mask = jnp.broadcast_to(target_mask, (N, 1, tgt_len, tgt_len))

    out = decoder_forward(params, X, enc_out, src_mask, target_mask,
                          embed_size, heads, vocab)
    out = jax.block_until_ready(out)
    assert out.shape == (N, tgt_len, vocab), out.shape
    assert bool(jnp.all(jnp.isfinite(out)))
    print("KERNEL_OK")
</pallas_src>

<mosaic_0001>
module attributes {stable_mosaic.version = 11 : i64} {
  func.func @_decoder_layer_kernel(%arg0: i32, %arg1: memref<1x8x32xf32, #tpu.memory_space<vmem>>, %arg2: memref<1x8x32xf32, #tpu.memory_space<vmem>>, %arg3: memref<1x8x8xf32, #tpu.memory_space<vmem>>, %arg4: memref<1x8x8xf32, #tpu.memory_space<vmem>>, %arg5: memref<32x96xf32, #tpu.memory_space<vmem>>, %arg6: memref<32x32xf32, #tpu.memory_space<vmem>>, %arg7: memref<1x32xf32, #tpu.memory_space<vmem>>, %arg8: memref<1x32xf32, #tpu.memory_space<vmem>>, %arg9: memref<1x32xf32, #tpu.memory_space<vmem>>, %arg10: memref<32x32xf32, #tpu.memory_space<vmem>>, %arg11: memref<32x64xf32, #tpu.memory_space<vmem>>, %arg12: memref<32x32xf32, #tpu.memory_space<vmem>>, %arg13: memref<1x32xf32, #tpu.memory_space<vmem>>, %arg14: memref<1x32xf32, #tpu.memory_space<vmem>>, %arg15: memref<1x32xf32, #tpu.memory_space<vmem>>, %arg16: memref<32x128xf32, #tpu.memory_space<vmem>>, %arg17: memref<1x128xf32, #tpu.memory_space<vmem>>, %arg18: memref<128x32xf32, #tpu.memory_space<vmem>>, %arg19: memref<1x32xf32, #tpu.memory_space<vmem>>, %arg20: memref<1x32xf32, #tpu.memory_space<vmem>>, %arg21: memref<1x32xf32, #tpu.memory_space<vmem>>, %arg22: memref<1x8x32xf32, #tpu.memory_space<vmem>>) attributes {dimension_semantics = [#tpu.dimension_semantics<parallel>], iteration_bounds = array<i64: 2>, scalar_prefetch = 0 : i64, scratch_operands = 0 : i64, tpu.core_type = #tpu.core_type<tc>, window_params = [{transform_indices = @transform_0, window_bounds = array<i64: 1, 8, 32>}, {transform_indices = @transform_1, window_bounds = array<i64: 1, 8, 32>}, {transform_indices = @transform_2, window_bounds = array<i64: 1, 8, 8>}, {transform_indices = @transform_3, window_bounds = array<i64: 1, 8, 8>}, {pipeline_mode = #tpu.pipeline_mode<synchronous>, transform_indices = @transform_4, window_bounds = array<i64: 32, 96>}, {pipeline_mode = #tpu.pipeline_mode<synchronous>, transform_indices = @transform_5, window_bounds = array<i64: 32, 32>}, {pipeline_mode = #tpu.pipeline_mode<synchronous>, transform_indices = @transform_6, window_bounds = array<i64: 1, 32>}, {pipeline_mode = #tpu.pipeline_mode<synchronous>, transform_indices = @transform_7, window_bounds = array<i64: 1, 32>}, {pipeline_mode = #tpu.pipeline_mode<synchronous>, transform_indices = @transform_8, window_bounds = array<i64: 1, 32>}, {pipeline_mode = #tpu.pipeline_mode<synchronous>, transform_indices = @transform_9, window_bounds = array<i64: 32, 32>}, {pipeline_mode = #tpu.pipeline_mode<synchronous>, transform_indices = @transform_10, window_bounds = array<i64: 32, 64>}, {pipeline_mode = #tpu.pipeline_mode<synchronous>, transform_indices = @transform_11, window_bounds = array<i64: 32, 32>}, {pipeline_mode = #tpu.pipeline_mode<synchronous>, transform_indices = @transform_12, window_bounds = array<i64: 1, 32>}, {pipeline_mode = #tpu.pipeline_mode<synchronous>, transform_indices = @transform_13, window_bounds = array<i64: 1, 32>}, {pipeline_mode = #tpu.pipeline_mode<synchronous>, transform_indices = @transform_14, window_bounds = array<i64: 1, 32>}, {pipeline_mode = #tpu.pipeline_mode<synchronous>, transform_indices = @transform_15, window_bounds = array<i64: 32, 128>}, {pipeline_mode = #tpu.pipeline_mode<synchronous>, transform_indices = @transform_16, window_bounds = array<i64: 1, 128>}, {pipeline_mode = #tpu.pipeline_mode<synchronous>, transform_indices = @transform_17, window_bounds = array<i64: 128, 32>}, {pipeline_mode = #tpu.pipeline_mode<synchronous>, transform_indices = @transform_18, window_bounds = array<i64: 1, 32>}, {pipeline_mode = #tpu.pipeline_mode<synchronous>, transform_indices = @transform_19, window_bounds = array<i64: 1, 32>}, {pipeline_mode = #tpu.pipeline_mode<synchronous>, transform_indices = @transform_20, window_bounds = array<i64: 1, 32>}, {transform_indices = @transform_21, window_bounds = array<i64: 1, 8, 32>}]} {
    %c0 = arith.constant 0 : index
    %c0_0 = arith.constant 0 : index
    %c0_1 = arith.constant 0 : index
    %0 = vector.load %arg1[%c0, %c0_0, %c0_1] : memref<1x8x32xf32, #tpu.memory_space<vmem>>, vector<1x8x32xf32>
    %1 = vector.shape_cast %0 : vector<1x8x32xf32> to vector<8x32xf32>
    %c0_2 = arith.constant 0 : index
    %c0_3 = arith.constant 0 : index
    %c0_4 = arith.constant 0 : index
    %2 = vector.load %arg2[%c0_2, %c0_3, %c0_4] : memref<1x8x32xf32, #tpu.memory_space<vmem>>, vector<1x8x32xf32>
    %3 = vector.shape_cast %2 : vector<1x8x32xf32> to vector<8x32xf32>
    %c0_5 = arith.constant 0 : index
    %c0_6 = arith.constant 0 : index
    %c0_7 = arith.constant 0 : index
    %4 = vector.load %arg3[%c0_5, %c0_6, %c0_7] : memref<1x8x8xf32, #tpu.memory_space<vmem>>, vector<1x8x8xf32>
    %5 = vector.shape_cast %4 : vector<1x8x8xf32> to vector<8x8xf32>
    %c0_8 = arith.constant 0 : index
    %c0_9 = arith.constant 0 : index
    %c0_10 = arith.constant 0 : index
    %6 = vector.load %arg4[%c0_8, %c0_9, %c0_10] : memref<1x8x8xf32, #tpu.memory_space<vmem>>, vector<1x8x8xf32>
    %7 = vector.shape_cast %6 : vector<1x8x8xf32> to vector<8x8xf32>
    %c0_11 = arith.constant 0 : index
    %c0_12 = arith.constant 0 : index
    %8 = vector.load %arg5[%c0_11, %c0_12] : memref<32x96xf32, #tpu.memory_space<vmem>>, vector<32x96xf32>
    %cst = arith.constant dense<0.000000e+00> : vector<8x96xf32>
    %9 = tpu.matmul %1, %8, %cst {dimension_numbers = #tpu.dot_dimension_numbers<[1], [0], [0], [1], [0, 0, 1, 1], [], []>} : vector<8x32xf32>, vector<32x96xf32>, vector<8x96xf32> -> vector<8x96xf32>
    %10 = vector.extract_strided_slice %9 {offsets = [0, 0], sizes = [8, 32], strides = [1, 1]} : vector<8x96xf32> to vector<8x32xf32>
    %11 = vector.extract_strided_slice %9 {offsets = [0, 32], sizes = [8, 32], strides = [1, 1]} : vector<8x96xf32> to vector<8x32xf32>
    %12 = vector.extract_strided_slice %9 {offsets = [0, 64], sizes = [8, 32], strides = [1, 1]} : vector<8x96xf32> to vector<8x32xf32>
    %cst_13 = arith.constant 0.176776692 : f32
    %13 = vector.broadcast %cst_13 : f32 to vector<8x32xf32>
    %14 = arith.mulf %10, %13 : vector<8x32xf32>
    %15 = vector.extract_strided_slice %14 {offsets = [0, 0], sizes = [8, 8], strides = [1, 1]} : vector<8x32xf32> to vector<8x8xf32>
    %16 = vector.extract_strided_slice %11 {offsets = [0, 0], sizes = [8, 8], strides = [1, 1]} : vector<8x32xf32> to vector<8x8xf32>
    %cst_14 = arith.constant dense<0.000000e+00> : vector<8x8xf32>
    %17 = tpu.matmul %15, %16, %cst_14 {dimension_numbers = #tpu.dot_dimension_numbers<[1], [1], [0], [0], [0, 0, 1, 0], [], []>} : vector<8x8xf32>, vector<8x8xf32>, vector<8x8xf32> -> vector<8x8xf32>
    %cst_15 = arith.constant 0.000000e+00 : f32
    %18 = vector.broadcast %cst_15 : f32 to vector<8x8xf32>
    %19 = arith.cmpf oeq, %5, %18 : vector<8x8xf32>
    %cst_16 = arith.constant -1.000000e+20 : f32
    %20 = vector.broadcast %cst_16 : f32 to vector<8x8xf32>
    %21 = arith.select %19, %20, %17 : vector<8x8xi1>, vector<8x8xf32>
    %cst_17 = arith.constant dense<0xFF800000> : vector<8xf32>
    %22 = vector.multi_reduction <maximumf>, %21, %cst_17 [1] : vector<8x8xf32> to vector<8xf32>
    %23 = vector.shape_cast %22 : vector<8xf32> to vector<8x1xf32>
    %24 = vector.broadcast %23 : vector<8x1xf32> to vector<8x8xf32>
    %25 = arith.subf %21, %24 : vector<8x8xf32>
    %26 = math.exp %25 : vector<8x8xf32>
    %cst_18 = arith.constant dense<0.000000e+00> : vector<8xf32>
    %27 = vector.multi_reduction <add>, %26, %cst_18 [1] : vector<8x8xf32> to vector<8xf32>
    %28 = vector.shape_cast %27 : vector<8xf32> to vector<8x1xf32>
    %29 = vector.broadcast %28 : vector<8x1xf32> to vector<8x8xf32>
    %30 = arith.divf %26, %29 : vector<8x8xf32>
    %31 = vector.extract_strided_slice %12 {offsets = [0, 0], sizes = [8, 8], strides = [1, 1]} : vector<8x32xf32> to vector<8x8xf32>
    %cst_19 = arith.constant dense<0.000000e+00> : vector<8x8xf32>
    %32 = tpu.matmul %30, %31, %cst_19 {dimension_numbers = #tpu.dot_dimension_numbers<[1], [0], [0], [1], [0, 0, 1, 1], [], []>} : vector<8x8xf32>, vector<8x8xf32>, vector<8x8xf32> -> vector<8x8xf32>
    %33 = vector.extract_strided_slice %14 {offsets = [0, 8], sizes = [8, 8], strides = [1, 1]} : vector<8x32xf32> to vector<8x8xf32>
    %34 = vector.extract_strided_slice %11 {offsets = [0, 8], sizes = [8, 8], strides = [1, 1]} : vector<8x32xf32> to vector<8x8xf32>
    %cst_20 = arith.constant dense<0.000000e+00> : vector<8x8xf32>
    %35 = tpu.matmul %33, %34, %cst_20 {dimension_numbers = #tpu.dot_dimension_numbers<[1], [1], [0], [0], [0, 0, 1, 0], [], []>} : vector<8x8xf32>, vector<8x8xf32>, vector<8x8xf32> -> vector<8x8xf32>
    %cst_21 = arith.constant 0.000000e+00 : f32
    %36 = vector.broadcast %cst_21 : f32 to vector<8x8xf32>
    %37 = arith.cmpf oeq, %5, %36 : vector<8x8xf32>
    %cst_22 = arith.constant -1.000000e+20 : f32
    %38 = vector.broadcast %cst_22 : f32 to vector<8x8xf32>
    %39 = arith.select %37, %38, %35 : vector<8x8xi1>, vector<8x8xf32>
    %cst_23 = arith.constant dense<0xFF800000> : vector<8xf32>
    %40 = vector.multi_reduction <maximumf>, %39, %cst_23 [1] : vector<8x8xf32> to vector<8xf32>
    %41 = vector.shape_cast %40 : vector<8xf32> to vector<8x1xf32>
    %42 = vector.broadcast %41 : vector<8x1xf32> to vector<8x8xf32>
    %43 = arith.subf %39, %42 : vector<8x8xf32>
    %44 = math.exp %43 : vector<8x8xf32>
    %cst_24 = arith.constant dense<0.000000e+00> : vector<8xf32>
    %45 = vector.multi_reduction <add>, %44, %cst_24 [1] : vector<8x8xf32> to vector<8xf32>
    %46 = vector.shape_cast %45 : vector<8xf32> to vector<8x1xf32>
    %47 = vector.broadcast %46 : vector<8x1xf32> to vector<8x8xf32>
    %48 = arith.divf %44, %47 : vector<8x8xf32>
    %49 = vector.extract_strided_slice %12 {offsets = [0, 8], sizes = [8, 8], strides = [1, 1]} : vector<8x32xf32> to vector<8x8xf32>
    %cst_25 = arith.constant dense<0.000000e+00> : vector<8x8xf32>
    %50 = tpu.matmul %48, %49, %cst_25 {dimension_numbers = #tpu.dot_dimension_numbers<[1], [0], [0], [1], [0, 0, 1, 1], [], []>} : vector<8x8xf32>, vector<8x8xf32>, vector<8x8xf32> -> vector<8x8xf32>
    %51 = vector.extract_strided_slice %14 {offsets = [0, 16], sizes = [8, 8], strides = [1, 1]} : vector<8x32xf32> to vector<8x8xf32>
    %52 = vector.extract_strided_slice %11 {offsets = [0, 16], sizes = [8, 8], strides = [1, 1]} : vector<8x32xf32> to vector<8x8xf32>
    %cst_26 = arith.constant dense<0.000000e+00> : vector<8x8xf32>
    %53 = tpu.matmul %51, %52, %cst_26 {dimension_numbers = #tpu.dot_dimension_numbers<[1], [1], [0], [0], [0, 0, 1, 0], [], []>} : vector<8x8xf32>, vector<8x8xf32>, vector<8x8xf32> -> vector<8x8xf32>
    %cst_27 = arith.constant 0.000000e+00 : f32
    %54 = vector.broadcast %cst_27 : f32 to vector<8x8xf32>
    %55 = arith.cmpf oeq, %5, %54 : vector<8x8xf32>
    %cst_28 = arith.constant -1.000000e+20 : f32
    %56 = vector.broadcast %cst_28 : f32 to vector<8x8xf32>
    %57 = arith.select %55, %56, %53 : vector<8x8xi1>, vector<8x8xf32>
    %cst_29 = arith.constant dense<0xFF800000> : vector<8xf32>
    %58 = vector.multi_reduction <maximumf>, %57, %cst_29 [1] : vector<8x8xf32> to vector<8xf32>
    %59 = vector.shape_cast %58 : vector<8xf32> to vector<8x1xf32>
    %60 = vector.broadcast %59 : vector<8x1xf32> to vector<8x8xf32>
    %61 = arith.subf %57, %60 : vector<8x8xf32>
    %62 = math.exp %61 : vector<8x8xf32>
    %cst_30 = arith.constant dense<0.000000e+00> : vector<8xf32>
    %63 = vector.multi_reduction <add>, %62, %cst_30 [1] : vector<8x8xf32> to vector<8xf32>
    %64 = vector.shape_cast %63 : vector<8xf32> to vector<8x1xf32>
    %65 = vector.broadcast %64 : vector<8x1xf32> to vector<8x8xf32>
    %66 = arith.divf %62, %65 : vector<8x8xf32>
    %67 = vector.extract_strided_slice %12 {offsets = [0, 16], sizes = [8, 8], strides = [1, 1]} : vector<8x32xf32> to vector<8x8xf32>
    %cst_31 = arith.constant dense<0.000000e+00> : vector<8x8xf32>
    %68 = tpu.matmul %66, %67, %cst_31 {dimension_numbers = #tpu.dot_dimension_numbers<[1], [0], [0], [1], [0, 0, 1, 1], [], []>} : vector<8x8xf32>, vector<8x8xf32>, vector<8x8xf32> -> vector<8x8xf32>
    %69 = vector.extract_strided_slice %14 {offsets = [0, 24], sizes = [8, 8], strides = [1, 1]} : vector<8x32xf32> to vector<8x8xf32>
    %70 = vector.extract_strided_slice %11 {offsets = [0, 24], sizes = [8, 8], strides = [1, 1]} : vector<8x32xf32> to vector<8x8xf32>
    %cst_32 = arith.constant dense<0.000000e+00> : vector<8x8xf32>
    %71 = tpu.matmul %69, %70, %cst_32 {dimension_numbers = #tpu.dot_dimension_numbers<[1], [1], [0], [0], [0, 0, 1, 0], [], []>} : vector<8x8xf32>, vector<8x8xf32>, vector<8x8xf32> -> vector<8x8xf32>
    %cst_33 = arith.constant 0.000000e+00 : f32
    %72 = vector.broadcast %cst_33 : f32 to vector<8x8xf32>
    %73 = arith.cmpf oeq, %5, %72 : vector<8x8xf32>
    %cst_34 = arith.constant -1.000000e+20 : f32
    %74 = vector.broadcast %cst_34 : f32 to vector<8x8xf32>
    %75 = arith.select %73, %74, %71 : vector<8x8xi1>, vector<8x8xf32>
    %cst_35 = arith.constant dense<0xFF800000> : vector<8xf32>
    %76 = vector.multi_reduction <maximumf>, %75, %cst_35 [1] : vector<8x8xf32> to vector<8xf32>
    %77 = vector.shape_cast %76 : vector<8xf32> to vector<8x1xf32>
    %78 = vector.broadcast %77 : vector<8x1xf32> to vector<8x8xf32>
    %79 = arith.subf %75, %78 : vector<8x8xf32>
    %80 = math.exp %79 : vector<8x8xf32>
    %cst_36 = arith.constant dense<0.000000e+00> : vector<8xf32>
    %81 = vector.multi_reduction <add>, %80, %cst_36 [1] : vector<8x8xf32> to vector<8xf32>
    %82 = vector.shape_cast %81 : vector<8xf32> to vector<8x1xf32>
    %83 = vector.broadcast %82 : vector<8x1xf32> to vector<8x8xf32>
    %84 = arith.divf %80, %83 : vector<8x8xf32>
    %85 = vector.extract_strided_slice %12 {offsets = [0, 24], sizes = [8, 8], strides = [1, 1]} : vector<8x32xf32> to vector<8x8xf32>
    %cst_37 = arith.constant dense<0.000000e+00> : vector<8x8xf32>
    %86 = tpu.matmul %84, %85, %cst_37 {dimension_numbers = #tpu.dot_dimension_numbers<[1], [0], [0], [1], [0, 0, 1, 1], [], []>} : vector<8x8xf32>, vector<8x8xf32>, vector<8x8xf32> -> vector<8x8xf32>
    %87 = tpu.concatenate %32, %50, %68, %86 in 1 : vector<8x8xf32>, vector<8x8xf32>, vector<8x8xf32>, vector<8x8xf32> -> vector<8x32xf32>
    %c0_38 = arith.constant 0 : index
    %c0_39 = arith.constant 0 : index
    %88 = vector.load %arg6[%c0_38, %c0_39] : memref<32x32xf32, #tpu.memory_space<vmem>>, vector<32x32xf32>
    %cst_40 = arith.constant dense<0.000000e+00> : vector<8x32xf32>
    %89 = tpu.matmul %87, %88, %cst_40 {dimension_numbers = #tpu.dot_dimension_numbers<[1], [0], [0], [1], [0, 0, 1, 1], [], []>} : vector<8x32xf32>, vector<32x32xf32>, vector<8x32xf32> -> vector<8x32xf32>
    %c0_41 = arith.constant 0 : index
    %c0_42 = arith.constant 0 : index
    %90 = vector.load %arg7[%c0_41, %c0_42] : memref<1x32xf32, #tpu.memory_space<vmem>>, vector<1x32xf32>
    %91 = vector.broadcast %90 : vector<1x32xf32> to vector<8x32xf32>
    %92 = arith.addf %89, %91 : vector<8x32xf32>
    %93 = arith.addf %92, %1 : vector<8x32xf32>
    %cst_43 = arith.constant dense<0.000000e+00> : vector<8xf32>
    %94 = vector.multi_reduction <add>, %93, %cst_43 [1] : vector<8x32xf32> to vector<8xf32>
    %95 = vector.shape_cast %94 : vector<8xf32> to vector<8x1xf32>
    %cst_44 = arith.constant 3.200000e+01 : f32
    %96 = vector.broadcast %cst_44 : f32 to vector<8x1xf32>
    %97 = arith.divf %95, %96 : vector<8x1xf32>
    %98 = vector.broadcast %97 : vector<8x1xf32> to vector<8x32xf32>
    %99 = arith.subf %93, %98 : vector<8x32xf32>
    %100 = vector.broadcast %97 : vector<8x1xf32> to vector<8x32xf32>
    %101 = arith.subf %93, %100 : vector<8x32xf32>
    %102 = arith.mulf %99, %101 : vector<8x32xf32>
    %cst_45 = arith.constant dense<0.000000e+00> : vector<8xf32>
    %103 = vector.multi_reduction <add>, %102, %cst_45 [1] : vector<8x32xf32> to vector<8xf32>
    %104 = vector.shape_cast %103 : vector<8xf32> to vector<8x1xf32>
    %cst_46 = arith.constant 3.200000e+01 : f32
    %105 = vector.broadcast %cst_46 : f32 to vector<8x1xf32>
    %106 = arith.divf %104, %105 : vector<8x1xf32>
    %107 = vector.broadcast %97 : vector<8x1xf32> to vector<8x32xf32>
    %108 = arith.subf %93, %107 : vector<8x32xf32>
    %cst_47 = arith.constant 9.99999974E-6 : f32
    %109 = vector.broadcast %cst_47 : f32 to vector<8x1xf32>
    %110 = arith.addf %106, %109 : vector<8x1xf32>
    %111 = math.rsqrt %110 : vector<8x1xf32>
    %112 = vector.broadcast %111 : vector<8x1xf32> to vector<8x32xf32>
    %113 = arith.mulf %108, %112 : vector<8x32xf32>
    %c0_48 = arith.constant 0 : index
    %c0_49 = arith.constant 0 : index
    %114 = vector.load %arg8[%c0_48, %c0_49] : memref<1x32xf32, #tpu.memory_space<vmem>>, vector<1x32xf32>
    %115 = vector.broadcast %114 : vector<1x32xf32> to vector<8x32xf32>
    %116 = arith.mulf %113, %115 : vector<8x32xf32>
    %c0_50 = arith.constant 0 : index
    %c0_51 = arith.constant 0 : index
    %117 = vector.load %arg9[%c0_50, %c0_51] : memref<1x32xf32, #tpu.memory_space<vmem>>, vector<1x32xf32>
    %118 = vector.broadcast %117 : vector<1x32xf32> to vector<8x32xf32>
    %119 = arith.addf %116, %118 : vector<8x32xf32>
    %c0_52 = arith.constant 0 : index
    %c0_53 = arith.constant 0 : index
    %120 = vector.load %arg10[%c0_52, %c0_53] : memref<32x32xf32, #tpu.memory_space<vmem>>, vector<32x32xf32>
    %cst_54 = arith.constant dense<0.000000e+00> : vector<8x32xf32>
    %121 = tpu.matmul %119, %120, %cst_54 {dimension_numbers = #tpu.dot_dimension_numbers<[1], [0], [0], [1], [0, 0, 1, 1], [], []>} : vector<8x32xf32>, vector<32x32xf32>, vector<8x32xf32> -> vector<8x32xf32>
    %c0_55 = arith.constant 0 : index
    %c0_56 = arith.constant 0 : index
    %122 = vector.load %arg11[%c0_55, %c0_56] : memref<32x64xf32, #tpu.memory_space<vmem>>, vector<32x64xf32>
    %cst_57 = arith.constant dense<0.000000e+00> : vector<8x64xf32>
    %123 = tpu.matmul %3, %122, %cst_57 {dimension_numbers = #tpu.dot_dimension_numbers<[1], [0], [0], [1], [0, 0, 1, 1], [], []>} : vector<8x32xf32>, vector<32x64xf32>, vector<8x64xf32> -> vector<8x64xf32>
    %124 = vector.extract_strided_slice %123 {offsets = [0, 0], sizes = [8, 32], strides = [1, 1]} : vector<8x64xf32> to vector<8x32xf32>
    %125 = vector.extract_strided_slice %123 {offsets = [0, 32], sizes = [8, 32], strides = [1, 1]} : vector<8x64xf32> to vector<8x32xf32>
    %cst_58 = arith.constant 0.176776692 : f32
    %126 = vector.broadcast %cst_58 : f32 to vector<8x32xf32>
    %127 = arith.mulf %121, %126 : vector<8x32xf32>
    %128 = vector.extract_strided_slice %127 {offsets = [0, 0], sizes = [8, 8], strides = [1, 1]} : vector<8x32xf32> to vector<8x8xf32>
    %129 = vector.extract_strided_slice %124 {offsets = [0, 0], sizes = [8, 8], strides = [1, 1]} : vector<8x32xf32> to vector<8x8xf32>
    %cst_59 = arith.constant dense<0.000000e+00> : vector<8x8xf32>
    %130 = tpu.matmul %128, %129, %cst_59 {dimension_numbers = #tpu.dot_dimension_numbers<[1], [1], [0], [0], [0, 0, 1, 0], [], []>} : vector<8x8xf32>, vector<8x8xf32>, vector<8x8xf32> -> vector<8x8xf32>
    %cst_60 = arith.constant 0.000000e+00 : f32
    %131 = vector.broadcast %cst_60 : f32 to vector<8x8xf32>
    %132 = arith.cmpf oeq, %7, %131 : vector<8x8xf32>
    %cst_61 = arith.constant -1.000000e+20 : f32
    %133 = vector.broadcast %cst_61 : f32 to vector<8x8xf32>
    %134 = arith.select %132, %133, %130 : vector<8x8xi1>, vector<8x8xf32>
    %cst_62 = arith.constant dense<0xFF800000> : vector<8xf32>
    %135 = vector.multi_reduction <maximumf>, %134, %cst_62 [1] : vector<8x8xf32> to vector<8xf32>
    %136 = vector.shape_cast %135 : vector<8xf32> to vector<8x1xf32>
    %137 = vector.broadcast %136 : vector<8x1xf32> to vector<8x8xf32>
    %138 = arith.subf %134, %137 : vector<8x8xf32>
    %139 = math.exp %138 : vector<8x8xf32>
    %cst_63 = arith.constant dense<0.000000e+00> : vector<8xf32>
    %140 = vector.multi_reduction <add>, %139, %cst_63 [1] : vector<8x8xf32> to vector<8xf32>
    %141 = vector.shape_cast %140 : vector<8xf32> to vector<8x1xf32>
    %142 = vector.broadcast %141 : vector<8x1xf32> to vector<8x8xf32>
    %143 = arith.divf %139, %142 : vector<8x8xf32>
    %144 = vector.extract_strided_slice %125 {offsets = [0, 0], sizes = [8, 8], strides = [1, 1]} : vector<8x32xf32> to vector<8x8xf32>
    %cst_64 = arith.constant dense<0.000000e+00> : vector<8x8xf32>
    %145 = tpu.matmul %143, %144, %cst_64 {dimension_numbers = #tpu.dot_dimension_numbers<[1], [0], [0], [1], [0, 0, 1, 1], [], []>} : vector<8x8xf32>, vector<8x8xf32>, vector<8x8xf32> -> vector<8x8xf32>
    %146 = vector.extract_strided_slice %127 {offsets = [0, 8], sizes = [8, 8], strides = [1, 1]} : vector<8x32xf32> to vector<8x8xf32>
    %147 = vector.extract_strided_slice %124 {offsets = [0, 8], sizes = [8, 8], strides = [1, 1]} : vector<8x32xf32> to vector<8x8xf32>
    %cst_65 = arith.constant dense<0.000000e+00> : vector<8x8xf32>
    %148 = tpu.matmul %146, %147, %cst_65 {dimension_numbers = #tpu.dot_dimension_numbers<[1], [1], [0], [0], [0, 0, 1, 0], [], []>} : vector<8x8xf32>, vector<8x8xf32>, vector<8x8xf32> -> vector<8x8xf32>
    %cst_66 = arith.constant 0.000000e+00 : f32
    %149 = vector.broadcast %cst_66 : f32 to vector<8x8xf32>
    %150 = arith.cmpf oeq, %7, %149 : vector<8x8xf32>
    %cst_67 = arith.constant -1.000000e+20 : f32
    %151 = vector.broadcast %cst_67 : f32 to vector<8x8xf32>
    %152 = arith.select %150, %151, %148 : vector<8x8xi1>, vector<8x8xf32>
    %cst_68 = arith.constant dense<0xFF800000> : vector<8xf32>
    %153 = vector.multi_reduction <maximumf>, %152, %cst_68 [1] : vector<8x8xf32> to vector<8xf32>
    %154 = vector.shape_cast %153 : vector<8xf32> to vector<8x1xf32>
    %155 = vector.broadcast %154 : vector<8x1xf32> to vector<8x8xf32>
    %156 = arith.subf %152, %155 : vector<8x8xf32>
    %157 = math.exp %156 : vector<8x8xf32>
    %cst_69 = arith.constant dense<0.000000e+00> : vector<8xf32>
    %158 = vector.multi_reduction <add>, %157, %cst_69 [1] : vector<8x8xf32> to vector<8xf32>
    %159 = vector.shape_cast %158 : vector<8xf32> to vector<8x1xf32>
    %160 = vector.broadcast %159 : vector<8x1xf32> to vector<8x8xf32>
    %161 = arith.divf %157, %160 : vector<8x8xf32>
    %162 = vector.extract_strided_slice %125 {offsets = [0, 8], sizes = [8, 8], strides = [1, 1]} : vector<8x32xf32> to vector<8x8xf32>
    %cst_70 = arith.constant dense<0.000000e+00> : vector<8x8xf32>
    %163 = tpu.matmul %161, %162, %cst_70 {dimension_numbers = #tpu.dot_dimension_numbers<[1], [0], [0], [1], [0, 0, 1, 1], [], []>} : vector<8x8xf32>, vector<8x8xf32>, vector<8x8xf32> -> vector<8x8xf32>
    %164 = vector.extract_strided_slice %127 {offsets = [0, 16], sizes = [8, 8], strides = [1, 1]} : vector<8x32xf32> to vector<8x8xf32>
    %165 = vector.extract_strided_slice %124 {offsets = [0, 16], sizes = [8, 8], strides = [1, 1]} : vector<8x32xf32> to vector<8x8xf32>
    %cst_71 = arith.constant dense<0.000000e+00> : vector<8x8xf32>
    %166 = tpu.matmul %164, %165, %cst_71 {dimension_numbers = #tpu.dot_dimension_numbers<[1], [1], [0], [0], [0, 0, 1, 0], [], []>} : vector<8x8xf32>, vector<8x8xf32>, vector<8x8xf32> -> vector<8x8xf32>
    %cst_72 = arith.constant 0.000000e+00 : f32
    %167 = vector.broadcast %cst_72 : f32 to vector<8x8xf32>
    %168 = arith.cmpf oeq, %7, %167 : vector<8x8xf32>
    %cst_73 = arith.constant -1.000000e+20 : f32
    %169 = vector.broadcast %cst_73 : f32 to vector<8x8xf32>
    %170 = arith.select %168, %169, %166 : vector<8x8xi1>, vector<8x8xf32>
    %cst_74 = arith.constant dense<0xFF800000> : vector<8xf32>
    %171 = vector.multi_reduction <maximumf>, %170, %cst_74 [1] : vector<8x8xf32> to vector<8xf32>
    %172 = vector.shape_cast %171 : vector<8xf32> to vector<8x1xf32>
    %173 = vector.broadcast %172 : vector<8x1xf32> to vector<8x8xf32>
    %174 = arith.subf %170, %173 : vector<8x8xf32>
    %175 = math.exp %174 : vector<8x8xf32>
    %cst_75 = arith.constant dense<0.000000e+00> : vector<8xf32>
    %176 = vector.multi_reduction <add>, %175, %cst_75 [1] : vector<8x8xf32> to vector<8xf32>
    %177 = vector.shape_cast %176 : vector<8xf32> to vector<8x1xf32>
    %178 = vector.broadcast %177 : vector<8x1xf32> to vector<8x8xf32>
    %179 = arith.divf %175, %178 : vector<8x8xf32>
    %180 = vector.extract_strided_slice %125 {offsets = [0, 16], sizes = [8, 8], strides = [1, 1]} : vector<8x32xf32> to vector<8x8xf32>
    %cst_76 = arith.constant dense<0.000000e+00> : vector<8x8xf32>
    %181 = tpu.matmul %179, %180, %cst_76 {dimension_numbers = #tpu.dot_dimension_numbers<[1], [0], [0], [1], [0, 0, 1, 1], [], []>} : vector<8x8xf32>, vector<8x8xf32>, vector<8x8xf32> -> vector<8x8xf32>
    %182 = vector.extract_strided_slice %127 {offsets = [0, 24], sizes = [8, 8], strides = [1, 1]} : vector<8x32xf32> to vector<8x8xf32>
    %183 = vector.extract_strided_slice %124 {offsets = [0, 24], sizes = [8, 8], strides = [1, 1]} : vector<8x32xf32> to vector<8x8xf32>
    %cst_77 = arith.constant dense<0.000000e+00> : vector<8x8xf32>
    %184 = tpu.matmul %182, %183, %cst_77 {dimension_numbers = #tpu.dot_dimension_numbers<[1], [1], [0], [0], [0, 0, 1, 0], [], []>} : vector<8x8xf32>, vector<8x8xf32>, vector<8x8xf32> -> vector<8x8xf32>
    %cst_78 = arith.constant 0.000000e+00 : f32
    %185 = vector.broadcast %cst_78 : f32 to vector<8x8xf32>
    %186 = arith.cmpf oeq, %7, %185 : vector<8x8xf32>
    %cst_79 = arith.constant -1.000000e+20 : f32
    %187 = vector.broadcast %cst_79 : f32 to vector<8x8xf32>
    %188 = arith.select %186, %187, %184 : vector<8x8xi1>, vector<8x8xf32>
    %cst_80 = arith.constant dense<0xFF800000> : vector<8xf32>
    %189 = vector.multi_reduction <maximumf>, %188, %cst_80 [1] : vector<8x8xf32> to vector<8xf32>
    %190 = vector.shape_cast %189 : vector<8xf32> to vector<8x1xf32>
    %191 = vector.broadcast %190 : vector<8x1xf32> to vector<8x8xf32>
    %192 = arith.subf %188, %191 : vector<8x8xf32>
    %193 = math.exp %192 : vector<8x8xf32>
    %cst_81 = arith.constant dense<0.000000e+00> : vector<8xf32>
    %194 = vector.multi_reduction <add>, %193, %cst_81 [1] : vector<8x8xf32> to vector<8xf32>
    %195 = vector.shape_cast %194 : vector<8xf32> to vector<8x1xf32>
    %196 = vector.broadcast %195 : vector<8x1xf32> to vector<8x8xf32>
    %197 = arith.divf %193, %196 : vector<8x8xf32>
    %198 = vector.extract_strided_slice %125 {offsets = [0, 24], sizes = [8, 8], strides = [1, 1]} : vector<8x32xf32> to vector<8x8xf32>
    %cst_82 = arith.constant dense<0.000000e+00> : vector<8x8xf32>
    %199 = tpu.matmul %197, %198, %cst_82 {dimension_numbers = #tpu.dot_dimension_numbers<[1], [0], [0], [1], [0, 0, 1, 1], [], []>} : vector<8x8xf32>, vector<8x8xf32>, vector<8x8xf32> -> vector<8x8xf32>
    %200 = tpu.concatenate %145, %163, %181, %199 in 1 : vector<8x8xf32>, vector<8x8xf32>, vector<8x8xf32>, vector<8x8xf32> -> vector<8x32xf32>
    %c0_83 = arith.constant 0 : index
    %c0_84 = arith.constant 0 : index
    %201 = vector.load %arg12[%c0_83, %c0_84] : memref<32x32xf32, #tpu.memory_space<vmem>>, vector<32x32xf32>
    %cst_85 = arith.constant dense<0.000000e+00> : vector<8x32xf32>
    %202 = tpu.matmul %200, %201, %cst_85 {dimension_numbers = #tpu.dot_dimension_numbers<[1], [0], [0], [1], [0, 0, 1, 1], [], []>} : vector<8x32xf32>, vector<32x32xf32>, vector<8x32xf32> -> vector<8x32xf32>
    %c0_86 = arith.constant 0 : index
    %c0_87 = arith.constant 0 : index
    %203 = vector.load %arg13[%c0_86, %c0_87] : memref<1x32xf32, #tpu.memory_space<vmem>>, vector<1x32xf32>
    %204 = vector.broadcast %203 : vector<1x32xf32> to vector<8x32xf32>
    %205 = arith.addf %202, %204 : vector<8x32xf32>
    %206 = arith.addf %205, %119 : vector<8x32xf32>
    %cst_88 = arith.constant dense<0.000000e+00> : vector<8xf32>
    %207 = vector.multi_reduction <add>, %206, %cst_88 [1] : vector<8x32xf32> to vector<8xf32>
    %208 = vector.shape_cast %207 : vector<8xf32> to vector<8x1xf32>
    %cst_89 = arith.constant 3.200000e+01 : f32
    %209 = vector.broadcast %cst_89 : f32 to vector<8x1xf32>
    %210 = arith.divf %208, %209 : vector<8x1xf32>
    %211 = vector.broadcast %210 : vector<8x1xf32> to vector<8x32xf32>
    %212 = arith.subf %206, %211 : vector<8x32xf32>
    %213 = vector.broadcast %210 : vector<8x1xf32> to vector<8x32xf32>
    %214 = arith.subf %206, %213 : vector<8x32xf32>
    %215 = arith.mulf %212, %214 : vector<8x32xf32>
    %cst_90 = arith.constant dense<0.000000e+00> : vector<8xf32>
    %216 = vector.multi_reduction <add>, %215, %cst_90 [1] : vector<8x32xf32> to vector<8xf32>
    %217 = vector.shape_cast %216 : vector<8xf32> to vector<8x1xf32>
    %cst_91 = arith.constant 3.200000e+01 : f32
    %218 = vector.broadcast %cst_91 : f32 to vector<8x1xf32>
    %219 = arith.divf %217, %218 : vector<8x1xf32>
    %220 = vector.broadcast %210 : vector<8x1xf32> to vector<8x32xf32>
    %221 = arith.subf %206, %220 : vector<8x32xf32>
    %cst_92 = arith.constant 9.99999974E-6 : f32
    %222 = vector.broadcast %cst_92 : f32 to vector<8x1xf32>
    %223 = arith.addf %219, %222 : vector<8x1xf32>
    %224 = math.rsqrt %223 : vector<8x1xf32>
    %225 = vector.broadcast %224 : vector<8x1xf32> to vector<8x32xf32>
    %226 = arith.mulf %221, %225 : vector<8x32xf32>
    %c0_93 = arith.constant 0 : index
    %c0_94 = arith.constant 0 : index
    %227 = vector.load %arg14[%c0_93, %c0_94] : memref<1x32xf32, #tpu.memory_space<vmem>>, vector<1x32xf32>
    %228 = vector.broadcast %227 : vector<1x32xf32> to vector<8x32xf32>
    %229 = arith.mulf %226, %228 : vector<8x32xf32>
    %c0_95 = arith.constant 0 : index
    %c0_96 = arith.constant 0 : index
    %230 = vector.load %arg15[%c0_95, %c0_96] : memref<1x32xf32, #tpu.memory_space<vmem>>, vector<1x32xf32>
    %231 = vector.broadcast %230 : vector<1x32xf32> to vector<8x32xf32>
    %232 = arith.addf %229, %231 : vector<8x32xf32>
    %c0_97 = arith.constant 0 : index
    %c0_98 = arith.constant 0 : index
    %233 = vector.load %arg16[%c0_97, %c0_98] : memref<32x128xf32, #tpu.memory_space<vmem>>, vector<32x128xf32>
    %cst_99 = arith.constant dense<0.000000e+00> : vector<8x128xf32>
    %234 = tpu.matmul %232, %233, %cst_99 {dimension_numbers = #tpu.dot_dimension_numbers<[1], [0], [0], [1], [0, 0, 1, 1], [], []>} : vector<8x32xf32>, vector<32x128xf32>, vector<8x128xf32> -> vector<8x128xf32>
    %c0_100 = arith.constant 0 : index
    %c0_101 = arith.constant 0 : index
    %235 = vector.load %arg17[%c0_100, %c0_101] : memref<1x128xf32, #tpu.memory_space<vmem>>, vector<1x128xf32>
    %236 = vector.broadcast %235 : vector<1x128xf32> to vector<8x128xf32>
    %237 = arith.addf %234, %236 : vector<8x128xf32>
    %cst_102 = arith.constant 0.000000e+00 : f32
    %238 = vector.broadcast %cst_102 : f32 to vector<8x128xf32>
    %239 = arith.maximumf %237, %238 : vector<8x128xf32>
    %c0_103 = arith.constant 0 : index
    %c0_104 = arith.constant 0 : index
    %240 = vector.load %arg18[%c0_103, %c0_104] : memref<128x32xf32, #tpu.memory_space<vmem>>, vector<128x32xf32>
    %cst_105 = arith.constant dense<0.000000e+00> : vector<8x32xf32>
    %241 = tpu.matmul %239, %240, %cst_105 {dimension_numbers = #tpu.dot_dimension_numbers<[1], [0], [0], [1], [0, 0, 1, 1], [], []>} : vector<8x128xf32>, vector<128x32xf32>, vector<8x32xf32> -> vector<8x32xf32>
    %c0_106 = arith.constant 0 : index
    %c0_107 = arith.constant 0 : index
    %242 = vector.load %arg19[%c0_106, %c0_107] : memref<1x32xf32, #tpu.memory_space<vmem>>, vector<1x32xf32>
    %243 = vector.broadcast %242 : vector<1x32xf32> to vector<8x32xf32>
    %244 = arith.addf %241, %243 : vector<8x32xf32>
    %245 = arith.addf %244, %232 : vector<8x32xf32>
    %cst_108 = arith.constant dense<0.000000e+00> : vector<8xf32>
    %246 = vector.multi_reduction <add>, %245, %cst_108 [1] : vector<8x32xf32> to vector<8xf32>
    %247 = vector.shape_cast %246 : vector<8xf32> to vector<8x1xf32>
    %cst_109 = arith.constant 3.200000e+01 : f32
    %248 = vector.broadcast %cst_109 : f32 to vector<8x1xf32>
    %249 = arith.divf %247, %248 : vector<8x1xf32>
    %250 = vector.broadcast %249 : vector<8x1xf32> to vector<8x32xf32>
    %251 = arith.subf %245, %250 : vector<8x32xf32>
    %252 = vector.broadcast %249 : vector<8x1xf32> to vector<8x32xf32>
    %253 = arith.subf %245, %252 : vector<8x32xf32>
    %254 = arith.mulf %251, %253 : vector<8x32xf32>
    %cst_110 = arith.constant dense<0.000000e+00> : vector<8xf32>
    %255 = vector.multi_reduction <add>, %254, %cst_110 [1] : vector<8x32xf32> to vector<8xf32>
    %256 = vector.shape_cast %255 : vector<8xf32> to vector<8x1xf32>
    %cst_111 = arith.constant 3.200000e+01 : f32
    %257 = vector.broadcast %cst_111 : f32 to vector<8x1xf32>
    %258 = arith.divf %256, %257 : vector<8x1xf32>
    %259 = vector.broadcast %249 : vector<8x1xf32> to vector<8x32xf32>
    %260 = arith.subf %245, %259 : vector<8x32xf32>
    %cst_112 = arith.constant 9.99999974E-6 : f32
    %261 = vector.broadcast %cst_112 : f32 to vector<8x1xf32>
    %262 = arith.addf %258, %261 : vector<8x1xf32>
    %263 = math.rsqrt %262 : vector<8x1xf32>
    %264 = vector.broadcast %263 : vector<8x1xf32> to vector<8x32xf32>
    %265 = arith.mulf %260, %264 : vector<8x32xf32>
    %c0_113 = arith.constant 0 : index
    %c0_114 = arith.constant 0 : index
    %266 = vector.load %arg20[%c0_113, %c0_114] : memref<1x32xf32, #tpu.memory_space<vmem>>, vector<1x32xf32>
    %267 = vector.broadcast %266 : vector<1x32xf32> to vector<8x32xf32>
    %268 = arith.mulf %265, %267 : vector<8x32xf32>
    %c0_115 = arith.constant 0 : index
    %c0_116 = arith.constant 0 : index
    %269 = vector.load %arg21[%c0_115, %c0_116] : memref<1x32xf32, #tpu.memory_space<vmem>>, vector<1x32xf32>
    %270 = vector.broadcast %269 : vector<1x32xf32> to vector<8x32xf32>
    %271 = arith.addf %268, %270 : vector<8x32xf32>
    %c0_117 = arith.constant 0 : index
    %c0_118 = arith.constant 0 : index
    %c0_119 = arith.constant 0 : index
    %272 = vector.load %arg22[%c0_117, %c0_118, %c0_119] : memref<1x8x32xf32, #tpu.memory_space<vmem>>, vector<1x8x32xf32>
    %273 = vector.shape_cast %272 : vector<1x8x32xf32> to vector<8x32xf32>
    %274 = vector.shape_cast %271 : vector<8x32xf32> to vector<1x8x32xf32>
    tpu.vector_store %arg22[%c0_117, %c0_118, %c0_119], %274 {strides = array<i32>} : memref<1x8x32xf32, #tpu.memory_space<vmem>>, vector<1x8x32xf32>,
    return
  }
  func.func @transform_0(%arg0: i32) -> (i32, i32, i32) {
    %c0_i32 = arith.constant 0 : i32
    %c0_i32_0 = arith.constant 0 : i32
    %c0_i32_1 = arith.constant 0 : i32
    return %arg0, %c0_i32, %c0_i32_0 : i32, i32, i32
  }
  func.func @transform_1(%arg0: i32) -> (i32, i32, i32) {
    %c0_i32 = arith.constant 0 : i32
    %c0_i32_0 = arith.constant 0 : i32
    %c0_i32_1 = arith.constant 0 : i32
    return %arg0, %c0_i32, %c0_i32_0 : i32, i32, i32
  }
  func.func @transform_2(%arg0: i32) -> (i32, i32, i32) {
    %c0_i32 = arith.constant 0 : i32
    %c0_i32_0 = arith.constant 0 : i32
    %c0_i32_1 = arith.constant 0 : i32
    return %arg0, %c0_i32, %c0_i32_0 : i32, i32, i32
  }
  func.func @transform_3(%arg0: i32) -> (i32, i32, i32) {
    %c0_i32 = arith.constant 0 : i32
    %c0_i32_0 = arith.constant 0 : i32
    %c0_i32_1 = arith.constant 0 : i32
    return %arg0, %c0_i32, %c0_i32_0 : i32, i32, i32
  }
  func.func @transform_4(%arg0: i32) -> (i32, i32) {
    %c0_i32 = arith.constant 0 : i32
    %c0_i32_0 = arith.constant 0 : i32
    %c0_i32_1 = arith.constant 0 : i32
    return %c0_i32, %c0_i32_0 : i32, i32
  }
  func.func @transform_5(%arg0: i32) -> (i32, i32) {
    %c0_i32 = arith.constant 0 : i32
    %c0_i32_0 = arith.constant 0 : i32
    %c0_i32_1 = arith.constant 0 : i32
    return %c0_i32, %c0_i32_0 : i32, i32
  }
  func.func @transform_6(%arg0: i32) -> (i32, i32) {
    %c0_i32 = arith.constant 0 : i32
    %c0_i32_0 = arith.constant 0 : i32
    %c0_i32_1 = arith.constant 0 : i32
    return %c0_i32, %c0_i32_0 : i32, i32
  }
  func.func @transform_7(%arg0: i32) -> (i32, i32) {
    %c0_i32 = arith.constant 0 : i32
    %c0_i32_0 = arith.constant 0 : i32
    %c0_i32_1 = arith.constant 0 : i32
    return %c0_i32, %c0_i32_0 : i32, i32
  }
  func.func @transform_8(%arg0: i32) -> (i32, i32) {
    %c0_i32 = arith.constant 0 : i32
    %c0_i32_0 = arith.constant 0 : i32
    %c0_i32_1 = arith.constant 0 : i32
    return %c0_i32, %c0_i32_0 : i32, i32
  }
  func.func @transform_9(%arg0: i32) -> (i32, i32) {
    %c0_i32 = arith.constant 0 : i32
    %c0_i32_0 = arith.constant 0 : i32
    %c0_i32_1 = arith.constant 0 : i32
    return %c0_i32, %c0_i32_0 : i32, i32
  }
  func.func @transform_10(%arg0: i32) -> (i32, i32) {
    %c0_i32 = arith.constant 0 : i32
    %c0_i32_0 = arith.constant 0 : i32
    %c0_i32_1 = arith.constant 0 : i32
    return %c0_i32, %c0_i32_0 : i32, i32
  }
  func.func @transform_11(%arg0: i32) -> (i32, i32) {
    %c0_i32 = arith.constant 0 : i32
    %c0_i32_0 = arith.constant 0 : i32
    %c0_i32_1 = arith.constant 0 : i32
    return %c0_i32, %c0_i32_0 : i32, i32
  }
  func.func @transform_12(%arg0: i32) -> (i32, i32) {
    %c0_i32 = arith.constant 0 : i32
    %c0_i32_0 = arith.constant 0 : i32
    %c0_i32_1 = arith.constant 0 : i32
    return %c0_i32, %c0_i32_0 : i32, i32
  }
  func.func @transform_13(%arg0: i32) -> (i32, i32) {
    %c0_i32 = arith.constant 0 : i32
    %c0_i32_0 = arith.constant 0 : i32
    %c0_i32_1 = arith.constant 0 : i32
    return %c0_i32, %c0_i32_0 : i32, i32
  }
  func.func @transform_14(%arg0: i32) -> (i32, i32) {
    %c0_i32 = arith.constant 0 : i32
    %c0_i32_0 = arith.constant 0 : i32
    %c0_i32_1 = arith.constant 0 : i32
    return %c0_i32, %c0_i32_0 : i32, i32
  }
  func.func @transform_15(%arg0: i32) -> (i32, i32) {
    %c0_i32 = arith.constant 0 : i32
    %c0_i32_0 = arith.constant 0 : i32
    %c0_i32_1 = arith.constant 0 : i32
    return %c0_i32, %c0_i32_0 : i32, i32
  }
  func.func @transform_16(%arg0: i32) -> (i32, i32) {
    %c0_i32 = arith.constant 0 : i32
    %c0_i32_0 = arith.constant 0 : i32
    %c0_i32_1 = arith.constant 0 : i32
    return %c0_i32, %c0_i32_0 : i32, i32
  }
  func.func @transform_17(%arg0: i32) -> (i32, i32) {
    %c0_i32 = arith.constant 0 : i32
    %c0_i32_0 = arith.constant 0 : i32
    %c0_i32_1 = arith.constant 0 : i32
    return %c0_i32, %c0_i32_0 : i32, i32
  }
  func.func @transform_18(%arg0: i32) -> (i32, i32) {
    %c0_i32 = arith.constant 0 : i32
    %c0_i32_0 = arith.constant 0 : i32
    %c0_i32_1 = arith.constant 0 : i32
    return %c0_i32, %c0_i32_0 : i32, i32
  }
  func.func @transform_19(%arg0: i32) -> (i32, i32) {
    %c0_i32 = arith.constant 0 : i32
    %c0_i32_0 = arith.constant 0 : i32
    %c0_i32_1 = arith.constant 0 : i32
    return %c0_i32, %c0_i32_0 : i32, i32
  }
  func.func @transform_20(%arg0: i32) -> (i32, i32) {
    %c0_i32 = arith.constant 0 : i32
    %c0_i32_0 = arith.constant 0 : i32
    %c0_i32_1 = arith.constant 0 : i32
    return %c0_i32, %c0_i32_0 : i32, i32
  }
  func.func @transform_21(%arg0: i32) -> (i32, i32, i32) {
    %c0_i32 = arith.constant 0 : i32
    %c0_i32_0 = arith.constant 0 : i32
    %c0_i32_1 = arith.constant 0 : i32
    return %arg0, %c0_i32, %c0_i32_0 : i32, i32, i32
  }
}

</mosaic_0001>

<bundles_post_ra>
// kernel: tpu_custom_call.1
= control target key start
LH: loop header
LB: loop body
LE: loop exit
PB: predicated region body
PF: predicated region fallthrough
CT: control target
= control target key end

     0   :  { %s4416_s0 = inlined_call_operand.hbm [shape: f32[2,8,32], index: 0, kind: input, shape index: {}]   ;;  %s4417_s1 = inlined_call_operand.hbm [shape: f32[2,8,32], index: 1, kind: input, shape index: {}]   ;;  %s4418_s2 = inlined_call_operand.hbm [shape: f32[2,8,8], index: 2, kind: input, shape index: {}]   ;;  %s4419_s3 = inlined_call_operand.hbm [shape: f32[2,8,8], index: 3, kind: input, shape index: {}]   ;;  %s4420_s4 = inlined_call_operand.vmem [shape: f32[32,96], index: 4, kind: input, shape index: {}]   ;;  %s4421_s5 = inlined_call_operand.vmem [shape: f32[32,32], index: 5, kind: input, shape index: {}]   ;;  %s4422_s6 = inlined_call_operand.vmem [shape: f32[1,32], index: 6, kind: input, shape index: {}]   ;;  %s4423_s7 = inlined_call_operand.vmem [shape: f32[1,32], index: 7, kind: input, shape index: {}]   ;;  %s4424_s8 = inlined_call_operand.vmem [shape: f32[1,32], index: 8, kind: input, shape index: {}]   ;;  %s4425_s9 = inlined_call_operand.vmem [shape: f32[32,32], index: 9, kind: input, shape index: {}]   ;;  %s4426_s10 = inlined_call_operand.vmem [shape: f32[32,64], index: 10, kind: input, shape index: {}]   ;;  %s4427_s11 = inlined_call_operand.vmem [shape: f32[32,32], index: 11, kind: input, shape index: {}]   ;;  %s4428_s12 = inlined_call_operand.vmem [shape: f32[1,32], index: 12, kind: input, shape index: {}]   ;;  %s4429_s13 = inlined_call_operand.vmem [shape: f32[1,32], index: 13, kind: input, shape index: {}]   ;;  %s4430_s14 = inlined_call_operand.vmem [shape: f32[1,32], index: 14, kind: input, shape index: {}]   ;;  %s4431_s15 = inlined_call_operand.hbm [shape: f32[32,128], index: 15, kind: input, shape index: {}]   ;;  %s4432_s16 = inlined_call_operand.vmem [shape: f32[1,128], index: 16, kind: input, shape index: {}]   ;;  %s4433_s17 = inlined_call_operand.vmem [shape: f32[128,32], index: 17, kind: input, shape index: {}]   ;;  %s4434_s18 = inlined_call_operand.vmem [shape: f32[1,32], index: 18, kind: input, shape index: {}]   ;;  %s4435_s19 = inlined_call_operand.vmem [shape: f32[1,32], index: 19, kind: input, shape index: {}]   ;;  %s4436_s20 = inlined_call_operand.vmem [shape: f32[1,32], index: 20, kind: input, shape index: {}]   ;;  %s4437_s21 = inlined_call_operand.hbm [shape: f32[2,8,32], index: 21, kind: output, shape index: {}]  }
   0x1   :  { %4464 = sst [smem:[#allocation23_spill]] %s4416_s0 }
   0x2   :  { %4465 = sst [smem:[#allocation24_spill]] %s4417_s1 }
   0x3   :  { %4466 = sst [smem:[#allocation25_spill]] %s4418_s2 }
   0x4   :  { %4467 = sst [smem:[#allocation26_spill]] %s4419_s3 }
   0x5   :  { %4468 = sst [smem:[#allocation27_spill]] %s4420_s4 }
   0x6   :  { %4469 = sst [smem:[#allocation28_spill]] %s4421_s5 }
   0x7   :  { %4470 = sst [smem:[#allocation29_spill]] %s4428_s12 }
   0x8   :  { %4471 = sst [smem:[#allocation30_spill]] %s4429_s13 }
   0x9   :  { %4472 = sst [smem:[#allocation31_spill]] %s4430_s14 }
   0xa   :  { %4473 = sst [smem:[#allocation32_spill]] %s4431_s15 }
   0xb   :  { %4474 = sst [smem:[#allocation33_spill]] %s4432_s16 }
   0xc   :  { %4475 = sst [smem:[#allocation34_spill]] %s4433_s17 }
   0xd   :  { %4476 = sst [smem:[#allocation35_spill]] %s4434_s18 }
   0xe   :  { %4477 = sst [smem:[#allocation36_spill]] %s4435_s19 }
   0xf   :  { %4478 = sst [smem:[#allocation37_spill]] %s4436_s20 }
  0x10   :  { %4479 = sst [smem:[#allocation38_spill]] %s4437_s21 }
  0x11   :  { %26 = vsyncpa [#allocation3], 0 }
  0x12   :  { %28 = vsyncpa [#allocation3 + $0x1], 0 }
  0x13   :  { %29 = vsyncpa [#allocation6], 0 }
  0x14   :  { %31 = vsyncpa [#allocation6 + $0x1], 0 }
  0x15   :  { %32 = vsyncpa [#allocation9], 0 }
  0x16   :  { %34 = vsyncpa [#allocation9 + $0x1], 0 }
  0x17   :  { %35 = vsyncpa [#allocation4], 0 }
  0x18   :  { %37 = vsyncpa [#allocation4 + $0x1], 0  ;;  %s3791_s2 = smov 0   ;;  %s3793_s25 = smov 0  }
  0x19   :  { %s3795_s26 = smov 0   ;;  %s3797_s27 = smov 0  }
  0x1a LB: > { %4480 = sst [smem:[#allocation17_spill]] %s3643_s2  ;;  %s3812_s3 = sadd.s32 4294967295, %s3655_s27   ;;  %s3655_s27 = sphi %s3797_s27, %s4525_s27   ;;  %s3651_s26 = sphi %s3795_s26, %s4527_s26   ;;  %s3647_s25 = sphi %s3793_s25, %s4529_s25   ;;  %s3643_s2 = sphi %s3791_s2, %s4528_s2  }
  0x1b   : > { %4481 = sst [smem:[#allocation18_spill]] %s3651_s26  ;;  %s2990_s28 = sadd.s32 4294967294, %s3655_s27  }
  0x1c   : > { %p63_p0 = scmp.ne.s32.totalorder %s3647_s25, %s3643_s2  ;;  %p4453_p1 = scmp.eq.s32.totalorder %s3812_s3, 0 }
  0x1d   : > { %p528_p3 = scmp.eq.s32.totalorder %s2990_s28, 1  ;;  %p2991_p5 = scmp.ge.s32.totalorder %s3655_s27, 1 }
  0x1e   : > { %p3821_p4 = por %p4453_p1, %p63_p0  ;;  %p535_p7 = scmp.lt.s32.totalorder %s3655_s27, 3 }
  0x1f   : > { %p3826_p6 = por %p528_p3, %p63_p0  ;;  %s3657_s30 = smov [#allocation10]  }
  0x20   : > { %s4482_s29 = scalar_select %p3821_p4, 1, 0 }
  0x21   : > { %s4483_s0 = scalar_select %p3826_p6, 1, 0 }
  0x22   : > { %p3831_p8 = pnand %p2991_p5, %p535_p7  ;;  %s580_s5 = sshll.u32 %s3657_s30, 4  ;;  %s581_s5 = int_to_ptr.vmem [resolvable:$true] %s580_s5 }
  0x23   : > { %4484 = sst [smem:[#allocation19_spill]] %s4483_s0  ;;  %s3845_s23 = sadd.s32 1, %s3655_s27  }
  0x24   : > { %s4485_s4 = scalar_select %p3831_p8, 1, 0 }
  0x25   : > { %p3327_p9 = pneg %p3831_p8  ;;  %4487 = sst [smem:[#allocation20_spill]] %s3845_s23 }
  0x26   : > { %s50_s1 = sadd.s32 1, %s3651_s26  ;;  %s47_s24 = ssub.s32 %s3655_s27, %s3845_s23 }
  0x27   : > { %p3840_p11 = pnand %p3327_p9, %p4453_p1  ;;  %s3452_s28 = scalar_lea.vmem %s581_s5, 512 }
  0x28   : > { %p3453_p13 = scmp.ne.s32.totalorder %s581_s5, %s3452_s28  ;;  %p3460_p5 = scmp.lt.s32.totalorder %s581_s5, %s581_s5 }
  0x29   : > { %p3443_p12 = pneg %p3840_p11  ;;  %p3461_p7 = scmp.lt.s32.totalorder %s3452_s28, %s3452_s28 }
  0x2b   : > { %p3455_p0 = pnand %p3453_p13, %p3443_p12  ;;  %p3462_p10 = por %p3461_p7, %p3460_p5 }
  0x2d   : > { %p3456_p3 = pneg %p3455_p0 }
  0x2f   : > { %p3463_p2 = pnand %p3462_p10, %p3456_p3 }
  0x31   : > { %3466 = shalt.err (!%p3463_p2)
}
  0x32   : > { %s3658_s30 = smov 128   ;;  %s3659_s23 = smov 8  }
  0x33   : > { %s4488_s15 = sld [smem:[#allocation32_spill]]  ;;  %p48_p9 = scmp.eq.s32.totalorder %s47_s24, 0 }
  0x34   : > { %p57_p2 = scmp.ne.s32.totalorder %s3651_s26, %s3647_s25  ;;  %p58_p10 = scmp.eq.s32.totalorder %s3655_s27, 0 }
  0x35   : > { %p3349_p12 = scmp.lt.s32.totalorder %s3655_s27, 2  ;;  %p4490_p0 = scmp.eq.s32.totalorder %s3812_s3, 1 }
  0x36   : > { %s3862_s28 = scalar_select %p48_p9, %s3651_s26, %s50_s1  }
  0x37   : > { %p59_p13 = por %p58_p10, %p57_p2  ;;  %p3866_p3 = por %p4490_p0, %p57_p2 }
  0x38   : > { %4489 = sst [smem:[#allocation21_spill]] %s3862_s28  ;;  %s4449_s20 = sand.u32 1, %s3651_s26  }
  0x39   : > { %3330 = dma.hbm_to_vmem [thread:$0]  (!%p3840_p11), %s4488_s15, 512, %s581_s5, [#allocation9], %s3658_s30, %s3658_s30, %s3659_s23  }
  0x3a   : > { %s4491_s21 = scalar_select %p3866_p3, 1, 0 }
  0x3b   : > { %s3872_s19 = sshll.u32 %s3655_s27, 7  ;;  %s3876_s2 = sshll.u32 %s4449_s20, 3 }
  0x3c   : > { %4492 = sst [smem:[#allocation22_spill]] %s4491_s21  ;;  %p3878_p11 = pnand %p3349_p12, %p59_p13 }
  0x3d   : > { %s4452_s5 = sand.u32 1, %s3655_s27   ;;  %s4494_s1 = sld [smem:[#allocation24_spill]] }
  0x3e   : > { %s631_s30 = scalar_lea.vmem [#allocation5], %s3876_s2  ;;  %s3892_s20 = scalar_lea.sflag [#allocation6], %s4452_s5 }
  0x3f   : > { %s638_s15 = sshll.u32 %s631_s30, 4  ;;  %p3898_p7 = pneg %p3878_p11  ;;  %s639_s15 = int_to_ptr.vmem [resolvable:$true] %s638_s15 }
  0x43   : > { %s3887_s24 = scalar_lea.hbm %s4494_s1, %s3872_s19  ;;  %s3472_s18 = scalar_lea.hbm %s4494_s1, 256 }
  0x44   : > { %s3467_s28 = scalar_lea.hbm %s3887_s24, 128  ;;  %p3473_p10 = scmp.lt.s32.totalorder %s3887_s24, %s4494_s1 }
  0x45   : > { %p3468_p5 = scmp.ne.s32.totalorder %s3887_s24, %s3467_s28  ;;  %p3474_p12 = scmp.lt.s32.totalorder %s3472_s18, %s3467_s28 }
  0x47   : > { %p3470_p9 = pnand %p3898_p7, %p3468_p5  ;;  %p3475_p13 = por %p3474_p12, %p3473_p10 }
  0x49   : > { %p3471_p2 = pneg %p3470_p9 }
  0x4b   : > { %p3476_p0 = pnand %p3475_p13, %p3471_p2 }
  0x4d   : > { %3479 = shalt.err (!%p3476_p0)
}
  0x4e   : > { %s3480_s5 = scalar_lea.vmem %s639_s15, 128  ;;  %s3660_s14 = smov [#allocation5]  }
  0x4f   : > { %p3481_p1 = scmp.ne.s32.totalorder %s639_s15, %s3480_s5  ;;  %s3485_s13 = sshll.u32 %s3660_s14, 4  ;;  %s3486_s13 = int_to_ptr.vmem [resolvable:$false] %s3485_s13 }
  0x50   : > { %s3487_s17 = scalar_lea.vmem %s3486_s13, 256  ;;  %p3488_p5 = scmp.lt.s32.totalorder %s639_s15, %s3486_s13 }
  0x51   : > { %p3483_p6 = pnand %p3481_p1, %p3898_p7  ;;  %p3489_p9 = scmp.lt.s32.totalorder %s3487_s17, %s3480_s5 }
  0x53   : > { %p3484_p3 = pneg %p3483_p6  ;;  %p3490_p4 = por %p3489_p9, %p3488_p5 }
  0x55   : > { %p3491_p8 = pnand %p3490_p4, %p3484_p3 }
  0x57   : > { %3494 = shalt.err (!%p3491_p8)
}
  0x58   : > { %3337 = dma.hbm_to_vmem [thread:$0]  (!%p3878_p11), %s3887_s24, 128, %s639_s15, %s3892_s20  }
  0x59   : > { %s4496_s28 = sld [smem:[#allocation23_spill]]  ;;  %s613_s13 = scalar_lea.vmem [#allocation2], %s3876_s2 }
  0x5a   : > { %s620_s17 = sshll.u32 %s613_s13, 4  ;;  %s4497_s5 = sand.u32 1, %s3651_s26   ;;  %s621_s17 = int_to_ptr.vmem [resolvable:$true] %s620_s17 }
  0x5b   : > { %s610_s22 = scalar_lea.sflag [#allocation3], %s4497_s5 }
  0x5f   : > { %s3921_s14 = scalar_lea.hbm %s4496_s28, %s3872_s19  ;;  %s3500_s24 = scalar_lea.hbm %s4496_s28, 256 }
  0x60   : > { %s3495_s23 = scalar_lea.hbm %s3921_s14, 128  ;;  %p3501_p8 = scmp.lt.s32.totalorder %s3921_s14, %s4496_s28 }
  0x61   : > { %p3496_p1 = scmp.ne.s32.totalorder %s3921_s14, %s3495_s23  ;;  %p3502_p3 = scmp.lt.s32.totalorder %s3500_s24, %s3495_s23 }
  0x63   : > { %p3498_p4 = pnand %p3496_p1, %p3898_p7  ;;  %p3503_p2 = por %p3502_p3, %p3501_p8 }
  0x65   : > { %p3499_p6 = pneg %p3498_p4 }
  0x67   : > { %p3504_p10 = pnand %p3503_p2, %p3499_p6 }
  0x69   : > { %3507 = shalt.err (!%p3504_p10)
}
  0x6a   : > { %s3508_s13 = scalar_lea.vmem %s621_s17, 128  ;;  %s3661_s5 = smov [#allocation2]  }
  0x6b   : > { %p3509_p12 = scmp.ne.s32.totalorder %s621_s17, %s3508_s13  ;;  %s3513_s1 = sshll.u32 %s3661_s5, 4  ;;  %s3514_s1 = int_to_ptr.vmem [resolvable:$false] %s3513_s1 }
  0x6c   : > { %s3515_s26 = scalar_lea.vmem %s3514_s1, 256  ;;  %p3516_p5 = scmp.lt.s32.totalorder %s621_s17, %s3514_s1 }
  0x6d   : > { %p3511_p13 = pnand %p3509_p12, %p3898_p7  ;;  %p3517_p9 = scmp.lt.s32.totalorder %s3515_s26, %s3508_s13 }
  0x6f   : > { %p3512_p0 = pneg %p3511_p13  ;;  %p3518_p1 = por %p3517_p9, %p3516_p5 }
  0x71   : > { %p3519_p4 = pnand %p3518_p1, %p3512_p0 }
  0x73   : > { %3522 = shalt.err (!%p3519_p4)
}
  0x74   : > { %3334 = dma.hbm_to_vmem [thread:$0]  (!%p3878_p11), %s3921_s14, 128, %s621_s17, %s610_s22  }
  0x75   : > { %s4498_s15 = sld [smem:[#allocation25_spill]]  ;;  %s649_s16 = scalar_lea.vmem [#allocation7], %s3876_s2 }
  0x76   : > { %s656_s18 = sshll.u32 %s649_s16, 4  ;;  %s657_s18 = int_to_ptr.vmem [resolvable:$true] %s656_s18 }
  0x7b   : > { %s654_s24 = scalar_lea.hbm %s4498_s15, %s3872_s19  ;;  %s3528_s13 = scalar_lea.hbm %s4498_s15, 256 }
  0x7c   : > { %s3523_s5 = scalar_lea.hbm %s654_s24, 128  ;;  %p3529_p2 = scmp.lt.s32.totalorder %s654_s24, %s4498_s15 }
  0x7d   : > { %p3524_p6 = scmp.ne.s32.totalorder %s654_s24, %s3523_s5  ;;  %p3530_p10 = scmp.lt.s32.totalorder %s3528_s13, %s3523_s5 }
  0x7f   : > { %p3526_p8 = pnand %p3524_p6, %p3898_p7  ;;  %p3531_p12 = por %p3530_p10, %p3529_p2 }
  0x81   : > { %p3527_p3 = pneg %p3526_p8 }
  0x83   : > { %p3532_p13 = pnand %p3531_p12, %p3527_p3 }
  0x85   : > { %3535 = shalt.err (!%p3532_p13)
}
  0x86   : > { %s3536_s14 = scalar_lea.vmem %s657_s18, 128  ;;  %s3662_s17 = smov [#allocation7]  }
  0x87   : > { %p3537_p0 = scmp.ne.s32.totalorder %s657_s18, %s3536_s14  ;;  %s3541_s22 = sshll.u32 %s3662_s17, 4  ;;  %s3542_s22 = int_to_ptr.vmem [resolvable:$false] %s3541_s22 }
  0x88   : > { %s3543_s23 = scalar_lea.vmem %s3542_s22, 256  ;;  %p3544_p1 = scmp.lt.s32.totalorder %s657_s18, %s3542_s22 }
  0x89   : > { %p3539_p5 = pnand %p3537_p0, %p3898_p7  ;;  %p3545_p4 = scmp.lt.s32.totalorder %s3543_s23, %s3536_s14 }
  0x8b   : > { %p3540_p9 = pneg %p3539_p5  ;;  %p3546_p6 = por %p3545_p4, %p3544_p1 }
  0x8d   : > { %p3547_p8 = pnand %p3546_p6, %p3540_p9 }
  0x8f   : > { %3550 = shalt.err (!%p3547_p8)
}
  0x90   : > { %3340 = dma.hbm_to_vmem [thread:$0]  (!%p3878_p11), %s654_s24, 128, %s657_s18, %s3892_s20  }
  0x91   : > { %s4499_s30 = sld [smem:[#allocation26_spill]]  ;;  %s667_s5 = scalar_lea.vmem [#allocation8], %s3876_s2 }
  0x92   : > { %s674_s26 = sshll.u32 %s667_s5, 4  ;;  %s4500_s1 = sand.u32 1, %s3655_s27   ;;  %s675_s26 = int_to_ptr.vmem [resolvable:$true] %s674_s26 }
  0x93   : > { %s664_s13 = scalar_lea.sflag [#allocation9], %s4500_s1 }
  0x97   : > { %s3964_s16 = scalar_lea.hbm %s4499_s30, %s3872_s19  ;;  %s3556_s24 = scalar_lea.hbm %s4499_s30, 256 }
  0x98   : > { %s3551_s14 = scalar_lea.hbm %s3964_s16, 128  ;;  %p3557_p12 = scmp.lt.s32.totalorder %s3964_s16, %s4499_s30 }
  0x99   : > { %p3552_p3 = scmp.ne.s32.totalorder %s3964_s16, %s3551_s14  ;;  %p3558_p13 = scmp.lt.s32.totalorder %s3556_s24, %s3551_s14 }
  0x9b   : > { %p3554_p2 = pnand %p3552_p3, %p3898_p7  ;;  %p3559_p0 = por %p3558_p13, %p3557_p12 }
  0x9d   : > { %p3555_p10 = pneg %p3554_p2 }
  0x9f   : > { %p3560_p5 = pnand %p3559_p0, %p3555_p10 }
  0xa1   : > { %3563 = shalt.err (!%p3560_p5)
}
  0xa2   : > { %s3564_s2 = scalar_lea.vmem %s675_s26, 128  ;;  %s3663_s22 = smov [#allocation8]  }
  0xa3   : > { %p3565_p9 = scmp.ne.s32.totalorder %s675_s26, %s3564_s2  ;;  %s3569_s23 = sshll.u32 %s3663_s22, 4  ;;  %s3570_s23 = int_to_ptr.vmem [resolvable:$false] %s3569_s23 }
  0xa4   : > { %s3571_s12 = scalar_lea.vmem %s3570_s23, 256  ;;  %p3572_p6 = scmp.lt.s32.totalorder %s675_s26, %s3570_s23 }
  0xa5   : > { %p3567_p1 = pnand %p3565_p9, %p3898_p7  ;;  %p3573_p8 = scmp.lt.s32.totalorder %s3571_s12, %s3564_s2 }
  0xa7   : > { %p3568_p4 = pneg %p3567_p1  ;;  %p3574_p3 = por %p3573_p8, %p3572_p6 }
  0xa9   : > { %p3575_p2 = pnand %p3574_p3, %p3568_p4 }
  0xab   : > { %3578 = shalt.err (!%p3575_p2)
}
  0xac   : > { %3343 = dma.hbm_to_vmem [thread:$0]  (!%p3878_p11), %s3964_s16, 128, %s675_s26, %s664_s13  }
  0xad   : > { %p4501_p10 = scmp.ne.s32.totalorder %s4485_s4, 0 }
  0xae   : > { %s3988_s21 = sand.u32 (!%p4501_p10), 1, %s3647_s25   ;;  %p4502_p7 = scmp.ne.s32.totalorder (!%p4501_p10), %s4482_s29, 0 }
  0xaf   : > { %683 = sbr.rel (%p4501_p10) target bundleno = 4245 (0x1095), region = 104  ;;  %s3991_s28 = sshll.u32 (!%p4501_p10), %s3988_s21, 3 }
  0xb0   : > { %s686_s5 = scalar_lea.sflag (!%p4501_p10), [#allocation3], %s3988_s21  ;;  %s689_s1 = scalar_lea.vmem (!%p4501_p10), [#allocation2], %s3991_s28 }
  0xb4   : > { %3622 = dma.done.wait (%p4502_p7), %s686_s5, 128  }
  0xb5   : > { %3624 = vsyncadd (%p4502_p7), %s686_s5, 4294967168  ;;  %s694_s4 = sand.u32 1, %s3812_s3   ;;  %s698_s16 = scalar_lea.vmem [#allocation5], %s3991_s28 }
  0xb6   : > { %s695_s0 = scalar_lea.sflag [#allocation6], %s694_s4 }
  0xb7   : > { %3626 = dma.done.wait (%p4502_p7), %s695_s0, 256  }
  0xb8   : > { %3628 = vsyncadd (%p4502_p7), %s695_s0, 4294967040  ;;  %s707_s26 = scalar_lea.vmem [#allocation7], %s3991_s28  ;;  %s713_s13 = scalar_lea.sflag [#allocation9], %s694_s4 }
  0xb9   : > { %s716_s14 = scalar_lea.vmem [#allocation8], %s3991_s28 }
  0xba   : > { %3630 = dma.done.wait (%p4502_p7), %s713_s13, 128  }
  0xbb   : > { %3632 = vsyncadd (%p4502_p7), %s713_s13, 4294967168  ;;  %p4503_p11 = scmp.eq.s32.totalorder %s3812_s3, 0 }
  0xbd   : > { %3634 = dma.done.wait (%p4503_p11), [#allocation9], 512   ;;  %p4504_p12 = pmov %p4503_p11 }
  0xbe   : > { %v3664_v0 = vmov 0.0   ;;  %vm3665_vm0 = vmmov 0   ;;  %s4505_s20 = sld [smem:[#allocation27_spill]]  ;;  %v4035_v5 = vld [vmem:[%s689_s1] sm:$0xff]  ;;  %vm802_vm1 = vcmask 261120   ;;  %s3666_s12 = smov 96  }
  0xbf   : > { %3636 = vsyncadd (%p4504_p12), [#allocation9], 4294966784  ;;  %3132 = vmatprep.subr.mxu1 %v3664_v0  ;;  %3140 = vmatprep.mubr.msk.f32.mxu1 %vm3665_vm0, %v3664_v0  ;;  %s3667_s5 = smov 120   ;;  %s3668_s1 = smov 88   ;;  %vm880_vm2 = vcmask 64512   ;;  %v796_v16 = vld [vmem:[%s707_s26] sm:$0xff] }
  0xc0   : > { %3153 = vmatprep.subr.mxu0 %v3664_v0  ;;  %3155 = vmatprep.mubr.msk.f32.mxu0 %vm3665_vm0, %v3664_v0  ;;  %s3669_s4 = smov 80   ;;  %s3670_s0 = smov 112   ;;  %vm956_vm3 = vcmp.eq.f32.partialorder %v796_v16, 0.0  ;;  %vm1556_vm4 = vcmask 130048   ;;  %vm1558_vm5 = vcmask 195584  }
  0xc1   : > { %s3671_s13 = smov 72   ;;  %s3672_s29 = smov 104  }
  0xc2   : > { %s3673_s26 = smov 56   ;;  %s3674_s17 = smov 64  }
  0xc3   : > { %s3675_s24 = smov 48   ;;  %s3676_s18 = smov 40  }
  0xc4   : > { %v801_v1 = vld [vmem:[%s4505_s20 + $0x18] sm:$0xff]  ;;  %v800_v2 = vld [vmem:[%s4505_s20 + $0x10] sm:$0xff]  ;;  %v799_v3 = vld [vmem:[%s4505_s20 + $0x8] sm:$0xff]  ;;  %s4506_s22 = sld [smem:[#allocation28_spill]]  ;;  %s4463_s23 = smov 8  }
  0xc5   : > { %3133 = vmatpush3.msra.mxu1 %v801_v1  ;;  %v798_v4 = vld [vmem:[%s4505_s20] sm:$0xff]  ;;  %s4512_s2 = sld [smem:[#allocation30_spill]] }
  0xc6   : > { %3134 = vmatprep.subr.mxu1 %v3664_v0 }
  0xc7   : > { %3135 = vmatpush3.msra.mxu1 %v800_v2 }
  0xc8   : > { %3136 = vmatprep.subr.mxu1 %v3664_v0 }
  0xc9   : > { %3137 = vmatpush3.msra.mxu1 %v799_v3 }
  0xca   : > { %3138 = vmatprep.subr.mxu1 %v3664_v0 }
  0xcb   : > { %3139 = vmatpush3.msra.mxu1 %v798_v4 }
  0xcc   : > { %3141 = vmatmul.mubr.msk.f32.vlgmr.msra.gmra.mxu1 %vm802_vm1, %v4035_v5  ;;  %3143 = vmatprep.subr.mxu1 %v3664_v0 }
  0xcd   : > { %3145 = vmatprep.mubr.msk.f32.mxu1 %vm3665_vm0, %v3664_v0 }
 0x18c   : > { %v4043_v6 = vpop.f32.mrf.mxu1 }
 0x18d   : > { %878 = vrot.lane.b32.xlu0 %v4043_v6, %s3666_s12  ;;  %v876_v7 = vmul.f32 0.17677669, %v4043_v6 }
 0x18e   : > { %v3142_v8 = vpop.f32.mrf.mxu1 }
 0x18f   : > { %1045 = vrot.lane.b32.xlu1 %v876_v7, %s3667_s5 }
 0x191   : > { %1047 = vrot.lane.b32.xlu0 %v4043_v6, %s3668_s1 }
 0x193   : > { %1213 = vrot.lane.b32.xlu1 %v4043_v6, %s3669_s4 }
 0x195   : > { %1211 = vrot.lane.b32.xlu0 %v876_v7, %s3670_s0 }
 0x197   : > { %1379 = vrot.lane.b32.xlu1 %v4043_v6, %s3671_s13 }
 0x199   : > { %1377 = vrot.lane.b32.xlu0 %v876_v7, %s3672_s29 }
 0x1ff   : > { %v879_v9 = vpop.permute.xlu0 %878 }
 0x200   : > { %3144 = vmatpush3.xpose.msk.msra.mxu1 %vm880_vm2, %v879_v9 }
 0x201   : > { %v1046_v10 = vpop.permute.xlu1 %1045  ;;  %3148 = vmatprep.subr.mxu1 %v3664_v0 }
 0x203   : > { %v1048_v11 = vpop.permute.xlu0 %1047  ;;  %3146 = vmatmul.mubr.msk.f32.vlgmr.msra.gmra.mxu1 %vm880_vm2, %v876_v7  ;;  %v1563_v7 = vld [vmem:[%s4506_s22 + $0x18] sm:$0xff] }
 0x204   : > { %3154 = vmatpush3.xpose.msk.msra.mxu0 %vm880_vm2, %v1048_v11  ;;  %3150 = vmatprep.mubr.msk.f32.mxu1 %vm3665_vm0, %v3664_v0 }
 0x205   : > { %v1214_v12 = vpop.permute.xlu1 %1213  ;;  %3163 = vmatprep.subr.mxu0 %v3664_v0 }
 0x207   : > { %3156 = vmatmul.mubr.msk.f32.vlgmr.msra.gmra.mxu0 %vm880_vm2, %v1046_v10  ;;  %v1212_v13 = vpop.permute.xlu0 %1211 }
 0x208   : > { %3164 = vmatpush3.xpose.msk.msra.mxu0 %vm880_vm2, %v1214_v12  ;;  %3165 = vmatprep.mubr.msk.f32.mxu0 %vm3665_vm0, %v3664_v0  ;;  %v1562_v12 = vld [vmem:[%s4506_s22 + $0x10] sm:$0xff] }
 0x209   : > { %3173 = vmatprep.subr.mxu0 %v3664_v0  ;;  %v1380_v14 = vpop.permute.xlu1 %1379 }
 0x20b   : > { %3166 = vmatmul.mubr.msk.f32.vlgmr.msra.gmra.mxu0 %vm880_vm2, %v1212_v13  ;;  %v1378_v15 = vpop.permute.xlu0 %1377  ;;  %v1561_v13 = vld [vmem:[%s4506_s22 + $0x8] sm:$0xff] }
 0x20c   : > { %3174 = vmatpush3.xpose.msk.msra.mxu0 %vm880_vm2, %v1380_v14  ;;  %3175 = vmatprep.mubr.msk.f32.mxu0 %vm3665_vm0, %v3664_v0  ;;  %v1560_v14 = vld [vmem:[%s4506_s22] sm:$0xff] }
 0x20d   : > { %3205 = vmatprep.subr.mxu0 %v3664_v0 }
 0x20f   : > { %3176 = vmatmul.mubr.msk.f32.vlgmr.msra.gmra.mxu0 %vm880_vm2, %v1378_v15 }
 0x210   : > { %3213 = vmatprep.mubr.msk.f32.mxu0 %vm3665_vm0, %v3664_v0 }
 0x2c3   : > { %v952_v17 = vpop.f32.mrf.mxu1 }
 0x2c4   : > { %v957_v18 = vsel %vm956_vm3, -1e+20, %v952_v17 }
 0x2c5   : > { %v3147_v19 = vpop.f32.mrf.mxu1  ;;  %v958_v20 = vsel %vm880_vm2, %v957_v18, -inf }
 0x2c6   : > { %959 = vmax.xlane.f32.xlu1 %v958_v20 }
 0x2c7   : > { %v1119_v21 = vpop.f32.mrf.mxu0 }
 0x2c8   : > { %v1123_v22 = vsel %vm956_vm3, -1e+20, %v1119_v21 }
 0x2c9   : > { %v3157_v23 = vpop.f32.mrf.mxu0  ;;  %v1124_v24 = vsel %vm880_vm2, %v1123_v22, -inf }
 0x2ca   : > { %1125 = vmax.xlane.f32.xlu0 %v1124_v24 }
 0x2cb   : > { %v1285_v25 = vpop.f32.mrf.mxu0 }
 0x2cc   : > { %v1289_v26 = vsel %vm956_vm3, -1e+20, %v1285_v25  ;;  %v3022_v25 = vld [vmem:[%s4422_s6] ss:$0 sm:$0xff] }
 0x2cd   : > { %v3167_v27 = vpop.f32.mrf.mxu0  ;;  %v1290_v28 = vsel %vm880_vm2, %v1289_v26, -inf }
 0x2ce   : > { %1291 = vmax.xlane.f32.xlu0 %v1290_v28 }
 0x2cf   : > { %v1451_v29 = vpop.f32.mrf.mxu0 }
 0x2d0   : > { %v1455_v30 = vsel %vm956_vm3, -1e+20, %v1451_v29 }
 0x2d1   : > { %v3177_v31 = vpop.f32.mrf.mxu0  ;;  %v1456_v32 = vsel %vm880_vm2, %v1455_v30, -inf }
 0x2d2   : > { %1457 = vmax.xlane.f32.xlu1 %v1456_v32 }
 0x2e3   : > { %1135 = vrot.lane.b32.xlu1 %v4043_v6, %s3673_s26  ;;  %s4462_s26 = smov 16  }
 0x34f   : > { %v960_v33 = vpop.xlane.xlu1 %959 }
 0x350   : > { %v961_v34 = vsub.f32 %v957_v18, %v960_v33 }
 0x352   : > { %v962_v35 = vmul.f32 1.442695, %v961_v34 }
 0x353   : > { %v1126_v36 = vpop.xlane.xlu0 %1125 }
 0x354   : > { %3403 = vpow2.f32 %v962_v35  ;;  %v1127_v37 = vsub.f32 %v1123_v22, %v1126_v36  ;;  %v1755_v36 = vld [vmem:[%s4426_s10 + $0x18] sm:$0xff] }
 0x355   : > { %3206 = vmatpush3.msra.mxu0 %v1755_v36 }
 0x356   : > { %v1128_v38 = vmul.f32 1.442695, %v1127_v37  ;;  %3207 = vmatprep.subr.mxu0 %v3664_v0  ;;  %v1753_v37 = vld [vmem:[%s4426_s10 + $0x8] sm:$0xff] }
 0x357   : > { %v1292_v48 = vpop.xlane.xlu0 %1291 }
 0x358   : > { %3405 = vpow2.f32 %v1128_v38  ;;  %v1293_v49 = vsub.f32 %v1289_v26, %v1292_v48  ;;  %v1752_v38 = vld [vmem:[%s4426_s10] sm:$0xff] }
 0x359   : > { %v3024_v48 = vld [vmem:[%s4423_s7] ss:$0 sm:$0xff] }
 0x35a   : > { %v1294_v50 = vmul.f32 1.442695, %v1293_v49 }
 0x35b   : > { %v1458_v39 = vpop.xlane.xlu1 %1457 }
 0x35c   : > { %v1459_v40 = vsub.f32 %v1455_v30, %v1458_v39  ;;  %v795_v39 = vld [vmem:[%s698_s16] sm:$0xff]  ;;  %s4508_s16 = smov 16  }
 0x35e   : > { %v1460_v41 = vmul.f32 1.442695, %v1459_v40  ;;  %v1678_v40 = vld [vmem:[%s4425_s9 + $0x18] sm:$0xff] }
 0x35f   : > { %v1136_v53 = vpop.permute.xlu1 %1135 }
 0x360   : > { %3407 = vpow2.f32 %v1460_v41  ;;  %v1677_v41 = vld [vmem:[%s4425_s9 + $0x10] sm:$0xff] }
 0x361   : > { %v3404_v42 = vpop.eup %3403  ;;  %3409 = vpow2.f32 %v1294_v50  ;;  %v3025_v50 = vld [vmem:[%s4424_s8] ss:$0 sm:$0xff] }
 0x362   : > { %v964_v43 = vsel %vm880_vm2, %v3404_v42, 0.0 }
 0x363   : > { %965 = vadd.xlane.f32.xlu0 %v964_v43  ;;  %v1675_v43 = vld [vmem:[%s4425_s9] sm:$0xff] }
 0x365   : > { %v3406_v44 = vpop.eup %3405 }
 0x366   : > { %v1130_v45 = vsel %vm880_vm2, %v3406_v44, 0.0 }
 0x367   : > { %1131 = vadd.xlane.f32.xlu1 %v1130_v45 }
 0x36d   : > { %v3408_v46 = vpop.eup %3407 }
 0x36e   : > { %v1462_v47 = vsel %vm880_vm2, %v3408_v46, 0.0  ;;  %v3410_v51 = vpop.eup %3409 }
 0x36f   : > { %1463 = vadd.xlane.f32.xlu1 %v1462_v47  ;;  %v1296_v52 = vsel %vm880_vm2, %v3410_v51, 0.0 }
 0x379   : > { %969 = vrot.lane.b32.xlu0 %v4043_v6, %s3674_s17  ;;  %s4461_s17 = smov 24  }
 0x380   : > { %1301 = vrot.lane.b32.xlu1 %v4043_v6, %s3675_s24  ;;  %s4510_s24 = sld [smem:[#allocation29_spill]] }
 0x398   : > { %1297 = vadd.xlane.f32.xlu0 %v1296_v52 }
 0x3ae   : > { %1467 = vrot.lane.b32.xlu0 %v4043_v6, %s3676_s18  ;;  %s4509_s18 = smov 24  }
 0x3ec   : > { %v966_v54 = vpop.xlane.xlu0 %965 }
 0x3ed   : > { %3411 = vrcp.f32 %v966_v54 }
 0x3f0   : > { %v970_v55 = vpop.permute.xlu0 %969  ;;  %v1132_v56 = vpop.xlane.xlu1 %1131 }
 0x3f1   : > { %3413 = vrcp.f32 %v1132_v56  ;;  %3149 = vmatpush3.msra.mxu1 %v970_v55 }
 0x3f2   : > { %3158 = vmatprep.subr.mxu1 %v3664_v0 }
 0x3f8   : > { %v1464_v58 = vpop.xlane.xlu1 %1463 }
 0x3fa   : > { %v3412_v57 = vpop.eup %3411 }
 0x3fb   : > { %v968_v59 = vmul.f32 %v3412_v57, %v3404_v42  ;;  %v1676_v42 = vld [vmem:[%s4425_s9 + $0x8] sm:$0xff] }
 0x3fc   : > { %v1302_v62 = vpop.permute.xlu1 %1301 }
 0x3fd   : > { %3151 = vmatmul.mubr.msk.f32.vlgmr.msra.gmra.mxu1 %vm880_vm2, %v968_v59 }
 0x3fe   : > { %v3414_v60 = vpop.eup %3413  ;;  %3159 = vmatpush3.msra.mxu1 %v1136_v53  ;;  %3160 = vmatprep.mubr.msk.f32.mxu1 %vm3665_vm0, %v3664_v0 }
 0x3ff   : > { %3168 = vmatprep.subr.mxu1 %v3664_v0  ;;  %v1134_v61 = vmul.f32 %v3414_v60, %v3406_v44 }
 0x401   : > { %3161 = vmatmul.mubr.msk.f32.vlgmr.msra.gmra.mxu1 %vm880_vm2, %v1134_v61 }
 0x402   : > { %3169 = vmatpush3.msra.mxu1 %v1302_v62  ;;  %3170 = vmatprep.mubr.msk.f32.mxu1 %vm3665_vm0, %v3664_v0 }
 0x403   : > { %3178 = vmatprep.subr.mxu1 %v3664_v0 }
 0x421   : > { %v1298_v63 = vpop.xlane.xlu0 %1297 }
 0x422   : > { %3415 = vrcp.f32 %v1298_v63 }
 0x423   : > { %3417 = vrcp.f32 %v1464_v58 }
 0x425   : > { %v1468_v4 = vpop.permute.xlu0 %1467 }
 0x42f   : > { %v3416_v1 = vpop.eup %3415 }
 0x430   : > { %v1300_v2 = vmul.f32 %v3416_v1, %v3410_v51  ;;  %v3418_v3 = vpop.eup %3417  ;;  %v797_v1 = vld [vmem:[%s716_s14] sm:$0xff]  ;;  %s4511_s14 = sld [smem:[#allocation34_spill]] }
 0x431   : > { %v1466_v6 = vmul.f32 %v3418_v3, %v3408_v46  ;;  %vm1906_vm6 = vcmp.eq.f32.partialorder %v797_v1, 0.0 }
 0x432   : > { %3171 = vmatmul.mubr.msk.f32.vlgmr.msra.gmra.mxu1 %vm880_vm2, %v1300_v2 }
 0x433   : > { %3179 = vmatpush3.msra.mxu1 %v1468_v4  ;;  %3180 = vmatprep.mubr.msk.f32.mxu1 %vm3665_vm0, %v3664_v0 }
 0x434   : > { %3183 = vmatprep.subr.mxu1 %v3664_v0 }
 0x436   : > { %3181 = vmatmul.mubr.msk.f32.vlgmr.msra.gmra.mxu1 %vm880_vm2, %v1466_v6 }
 0x437   : > { %3191 = vmatprep.mubr.msk.f32.mxu1 %vm3665_vm0, %v3664_v0  ;;  %3184 = vmatpush3.msra.mxu1 %v1563_v7 }
 0x438   : > { %3185 = vmatprep.subr.mxu1 %v3664_v0 }
 0x439   : > { %3186 = vmatpush3.msra.mxu1 %v1562_v12 }
 0x43a   : > { %3187 = vmatprep.subr.mxu1 %v3664_v0 }
 0x43b   : > { %3188 = vmatpush3.msra.mxu1 %v1561_v13 }
 0x43c   : > { %3189 = vmatprep.subr.mxu1 %v3664_v0 }
 0x43d   : > { %3190 = vmatpush3.msra.mxu1 %v1560_v14 }
 0x43e   : > { %3194 = vmatprep.subr.mxu1 %v3664_v0 }
 0x4bd   : > { %v1041_v8 = vpop.f32.mrf.mxu1 }
 0x4bf   : > { %v3152_v9 = vpop.f32.mrf.mxu1 }
 0x4c1   : > { %v1207_v10 = vpop.f32.mrf.mxu1 }
 0x4c2   : > { %1544 = vrot.lane.b32.xlu1 %v1207_v10, %s4463_s23  ;;  %s4507_s23 = smov 8  }
 0x4c3   : > { %v3162_v11 = vpop.f32.mrf.mxu1 }
 0x4f2   : > { %v1373_v15 = vpop.f32.mrf.mxu1 }
 0x4f3   : > { %1548 = vrot.lane.b32.xlu0 %v1373_v15, %s4462_s26 }
 0x4f4   : > { %v3172_v16 = vpop.f32.mrf.mxu1 }
 0x4f6   : > { %v1539_v17 = vpop.f32.mrf.mxu1 }
 0x4f7   : > { %1552 = vrot.lane.b32.xlu1 %v1539_v17, %s4461_s17  ;;  %s4513_s17 = sld [smem:[#allocation31_spill]] }
 0x4f8   : > { %v3182_v18 = vpop.f32.mrf.mxu1 }
 0x534   : > { %v1545_v19 = vpop.permute.xlu1 %1544 }
 0x535   : > { %v1555_v21 = vsel %vm880_vm2, %v1041_v8, %v1545_v19 }
 0x565   : > { %v1549_v20 = vpop.permute.xlu0 %1548 }
 0x566   : > { %v1557_v22 = vsel %vm1556_vm4, %v1555_v21, %v1549_v20 }
 0x569   : > { %v1553_v23 = vpop.permute.xlu1 %1552 }
 0x56a   : > { %v1559_v24 = vsel %vm1558_vm5, %v1557_v22, %v1553_v23 }
 0x56b   : > { %3192 = vmatmul.mubr.msk.f32.vlgmr.msra.gmra.mxu1 %vm802_vm1, %v1559_v24 }
 0x56c   : > { %3202 = vmatprep.mubr.msk.f32.mxu1 %vm3665_vm0, %v3664_v0  ;;  %3195 = vmatpush3.msra.mxu1 %v1678_v40 }
 0x56d   : > { %3196 = vmatprep.subr.mxu1 %v3664_v0 }
 0x56e   : > { %3197 = vmatpush3.msra.mxu1 %v1677_v41 }
 0x56f   : > { %3198 = vmatprep.subr.mxu1 %v3664_v0 }
 0x570   : > { %3199 = vmatpush3.msra.mxu1 %v1676_v42 }
 0x571   : > { %3200 = vmatprep.subr.mxu1 %v3664_v0 }
 0x572   : > { %3201 = vmatpush3.msra.mxu1 %v1675_v43 }
 0x573   : > { %3216 = vmatprep.subr.mxu1 %v3664_v0 }
 0x62b   : > { %v1640_v26 = vpop.f32.mrf.mxu1 }
 0x62c   : > { %v1641_v27 = vadd.f32 %v3022_v25, %v1640_v26 }
 0x62d   : > { %v3193_v28 = vpop.f32.mrf.mxu1 }
 0x62e   : > { %v1644_v29 = vadd.f32 %v1641_v27, %v4035_v5  ;;  %v1754_v5 = vld [vmem:[%s4426_s10 + $0x10] sm:$0xff] }
 0x62f   : > { %3208 = vmatpush3.msra.mxu0 %v1754_v5 }
 0x630   : > { %v1645_v30 = vsel %vm802_vm1, %v1644_v29, 0.0  ;;  %3209 = vmatprep.subr.mxu0 %v3664_v0 }
 0x631   : > { %1646 = vadd.xlane.f32.xlu0 %v1645_v30  ;;  %3210 = vmatpush3.msra.mxu0 %v1753_v37 }
 0x632   : > { %3211 = vmatprep.subr.mxu0 %v3664_v0 }
 0x633   : > { %3212 = vmatpush3.msra.mxu0 %v1752_v38 }
 0x634   : > { %3214 = vmatmul.mubr.msk.f32.vlgmr.msra.gmra.mxu0 %vm802_vm1, %v795_v39  ;;  %3226 = vmatprep.subr.mxu0 %v3664_v0 }
 0x635   : > { %3228 = vmatprep.mubr.msk.f32.mxu0 %vm3665_vm0, %v3664_v0 }
 0x6ba   : > { %v1647_v31 = vpop.xlane.xlu0 %1646 }
 0x6bb   : > { %v1649_v32 = vmul.f32 0.03125, %v1647_v31 }
 0x6bd   : > { %v1650_v33 = vsub.f32 %v1644_v29, %v1649_v32 }
 0x6bf   : > { %v1651_v34 = vmul.f32 %v1650_v33, %v1650_v33 }
 0x6c1   : > { %v1652_v35 = vsel %vm802_vm1, %v1651_v34, 0.0 }
 0x6c2   : > { %1653 = vadd.xlane.f32.xlu1 %v1652_v35 }
 0x6f4   : > { %v4191_v53 = vpop.f32.mrf.mxu0 }
 0x6f5   : > { %1997 = vrot.lane.b32.xlu0 %v4191_v53, %s3667_s5 }
 0x6f6   : > { %v3215_v54 = vpop.f32.mrf.mxu0 }
 0x6f9   : > { %2163 = vrot.lane.b32.xlu0 %v4191_v53, %s3670_s0 }
 0x6fd   : > { %2329 = vrot.lane.b32.xlu0 %v4191_v53, %s3672_s29 }
 0x74b   : > { %v1654_v44 = vpop.xlane.xlu1 %1653 }
 0x74c   : > { %v1655_v45 = vmul.f32 0.03125, %v1654_v44 }
 0x74e   : > { %v1656_v46 = vadd.f32 1e-05, %v1655_v45 }
 0x750   : > { %3419 = vrsqrt.f32 %v1656_v46 }
 0x75d   : > { %v3420_v47 = vpop.eup %3419 }
 0x75e   : > { %v1658_v49 = vmul.f32 %v3420_v47, %v1650_v33 }
 0x760   : > { %v1666_v51 = vmul.f32 %v3024_v48, %v1658_v49 }
 0x762   : > { %v4185_v52 = vadd.f32 %v3025_v50, %v1666_v51 }
 0x764   : > { %3203 = vmatmul.mubr.msk.f32.vlgmr.msra.gmra.mxu1 %vm802_vm1, %v4185_v52 }
 0x765   : > { %3218 = vmatprep.mubr.msk.f32.mxu1 %vm3665_vm0, %v3664_v0  ;;  %3217 = vmatpush3.xpose.msk.msra.mxu1 %vm880_vm2, %v4191_v53 }
 0x766   : > { %3221 = vmatprep.subr.mxu1 %v3664_v0 }
 0x767   : > { %v1998_v55 = vpop.permute.xlu0 %1997 }
 0x768   : > { %3227 = vmatpush3.xpose.msk.msra.mxu0 %vm880_vm2, %v1998_v55 }
 0x769   : > { %3236 = vmatprep.subr.mxu0 %v3664_v0 }
 0x76b   : > { %v2164_v59 = vpop.permute.xlu0 %2163 }
 0x76f   : > { %v2330_v62 = vpop.permute.xlu0 %2329 }
 0x824   : > { %v1748_v56 = vpop.f32.mrf.mxu1 }
 0x825   : > { %v1829_v57 = vmul.f32 0.17677669, %v1748_v56 }
 0x826   : > { %v3204_v58 = vpop.f32.mrf.mxu1 }
 0x827   : > { %1995 = vrot.lane.b32.xlu1 %v1829_v57, %s3667_s5  ;;  %3219 = vmatmul.mubr.msk.f32.vlgmr.msra.gmra.mxu1 %vm880_vm2, %v1829_v57  ;;  %v2510_v58 = vld [vmem:[%s4427_s11 + $0x10] sm:$0xff] }
 0x828   : > { %3223 = vmatprep.mubr.msk.f32.mxu1 %vm3665_vm0, %v3664_v0 }
 0x82b   : > { %2161 = vrot.lane.b32.xlu1 %v1829_v57, %s3670_s0  ;;  %s3050_s0 = sshll.u32 %s3812_s3, 7 }
 0x82f   : > { %2327 = vrot.lane.b32.xlu1 %v1829_v57, %s3672_s29  ;;  %v2511_v57 = vld [vmem:[%s4427_s11 + $0x18] sm:$0xff] }
 0x899   : > { %v1996_v60 = vpop.permute.xlu1 %1995 }
 0x89a   : > { %3229 = vmatmul.mubr.msk.f32.vlgmr.msra.gmra.mxu0 %vm880_vm2, %v1996_v60  ;;  %v2508_v60 = vld [vmem:[%s4427_s11] sm:$0xff] }
 0x89b   : > { %3237 = vmatpush3.xpose.msk.msra.mxu0 %vm880_vm2, %v2164_v59  ;;  %3238 = vmatprep.mubr.msk.f32.mxu0 %vm3665_vm0, %v3664_v0  ;;  %v2509_v59 = vld [vmem:[%s4427_s11 + $0x8] sm:$0xff] }
 0x89c   : > { %3246 = vmatprep.subr.mxu0 %v3664_v0 }
 0x89d   : > { %v2162_v61 = vpop.permute.xlu1 %2161 }
 0x89e   : > { %3239 = vmatmul.mubr.msk.f32.vlgmr.msra.gmra.mxu0 %vm880_vm2, %v2162_v61 }
 0x89f   : > { %3247 = vmatpush3.xpose.msk.msra.mxu0 %vm880_vm2, %v2330_v62  ;;  %3248 = vmatprep.mubr.msk.f32.mxu0 %vm3665_vm0, %v3664_v0 }
 0x8a0   : > { %3256 = vmatprep.subr.mxu0 %v3664_v0 }
 0x8a1   : > { %v2328_v63 = vpop.permute.xlu1 %2327 }
 0x8a2   : > { %3249 = vmatmul.mubr.msk.f32.vlgmr.msra.gmra.mxu0 %vm880_vm2, %v2328_v63 }
 0x8a3   : > { %3264 = vmatprep.mubr.msk.f32.mxu0 %vm3665_vm0, %v3664_v0  ;;  %3257 = vmatpush3.msra.mxu0 %v2511_v57 }
 0x8a4   : > { %3258 = vmatprep.subr.mxu0 %v3664_v0 }
 0x8a5   : > { %3259 = vmatpush3.msra.mxu0 %v2510_v58 }
 0x8a6   : > { %3260 = vmatprep.subr.mxu0 %v3664_v0 }
 0x8a7   : > { %3261 = vmatpush3.msra.mxu0 %v2509_v59 }
 0x8a8   : > { %3262 = vmatprep.subr.mxu0 %v3664_v0 }
 0x8a9   : > { %3263 = vmatpush3.msra.mxu0 %v2508_v60 }
 0x8aa   : > { %3278 = vmatprep.subr.mxu0 %v3664_v0 }
 0x8e7   : > { %v1902_v2 = vpop.f32.mrf.mxu1 }
 0x8e8   : > { %v1907_v3 = vsel %vm1906_vm6, -1e+20, %v1902_v2 }
 0x8e9   : > { %v3220_v4 = vpop.f32.mrf.mxu1  ;;  %v1908_v6 = vsel %vm880_vm2, %v1907_v3, -inf }
 0x8ea   : > { %1909 = vmax.xlane.f32.xlu0 %v1908_v6 }
 0x95a   : > { %v2069_v7 = vpop.f32.mrf.mxu0 }
 0x95b   : > { %v2073_v8 = vsel %vm1906_vm6, -1e+20, %v2069_v7 }
 0x95c   : > { %v3230_v9 = vpop.f32.mrf.mxu0  ;;  %v2074_v10 = vsel %vm880_vm2, %v2073_v8, -inf }
 0x95d   : > { %2075 = vmax.xlane.f32.xlu1 %v2074_v10 }
 0x95e   : > { %v2235_v11 = vpop.f32.mrf.mxu0 }
 0x95f   : > { %v2239_v12 = vsel %vm1906_vm6, -1e+20, %v2235_v11  ;;  %v3040_v11 = vld [vmem:[%s4510_s24] ss:$0 sm:$0xff]  ;;  %s4516_s24 = sld [smem:[#allocation22_spill]] }
 0x960   : > { %v3240_v13 = vpop.f32.mrf.mxu0  ;;  %v2240_v14 = vsel %vm880_vm2, %v2239_v12, -inf }
 0x961   : > { %2241 = vmax.xlane.f32.xlu0 %v2240_v14 }
 0x962   : > { %v2401_v15 = vpop.f32.mrf.mxu0 }
 0x963   : > { %v2405_v16 = vsel %vm1906_vm6, -1e+20, %v2401_v15 }
 0x964   : > { %v3250_v17 = vpop.f32.mrf.mxu0  ;;  %v2406_v18 = vsel %vm880_vm2, %v2405_v16, -inf }
 0x965   : > { %2407 = vmax.xlane.f32.xlu0 %v2406_v18  ;;  %p4520_p0 = scmp.ne.s32.totalorder %s4516_s24, 0 }
 0x96e   : > { %1919 = vrot.lane.b32.xlu1 %v4191_v53, %s3666_s12  ;;  %s4517_s12 = sld [smem:[#allocation36_spill]] }
 0x973   : > { %v1910_v19 = vpop.xlane.xlu0 %1909 }
 0x974   : > { %v1911_v20 = vsub.f32 %v1907_v3, %v1910_v19 }
 0x976   : > { %v1912_v21 = vmul.f32 1.442695, %v1911_v20 }
 0x978   : > { %3421 = vpow2.f32 %v1912_v21 }
 0x985   : > { %v3422_v22 = vpop.eup %3421 }
 0x986   : > { %v1914_v23 = vsel %vm880_vm2, %v3422_v22, 0.0 }
 0x992   : > { %1915 = vadd.xlane.f32.xlu1 %v1914_v23  ;;  %v2624_v23 = vld [vmem:[#allocation10 + $0x10] sm:$0xff] }
 0x9e6   : > { %v2076_v24 = vpop.xlane.xlu1 %2075 }
 0x9e7   : > { %v2077_v25 = vsub.f32 %v2073_v8, %v2076_v24  ;;  %v2623_v24 = vld [vmem:[#allocation10 + $0x8] sm:$0xff] }
 0x9e9   : > { %v2078_v26 = vmul.f32 1.442695, %v2077_v25  ;;  %v2722_v25 = vld [vmem:[%s4511_s14 + $0x78] sm:$0xff] }
 0x9ea   : > { %v1920_v27 = vpop.permute.xlu1 %1919  ;;  %v2242_v28 = vpop.xlane.xlu0 %2241 }
 0x9eb   : > { %3423 = vpow2.f32 %v2078_v26  ;;  %v2243_v29 = vsub.f32 %v2239_v12, %v2242_v28  ;;  %3222 = vmatpush3.msra.mxu1 %v1920_v27  ;;  %v2721_v26 = vld [vmem:[%s4511_s14 + $0x70] sm:$0xff]  ;;  %v2720_v27 = vld [vmem:[%s4511_s14 + $0x68] sm:$0xff]  ;;  %v2719_v28 = vld [vmem:[%s4511_s14 + $0x60] sm:$0xff] }
 0x9ec   : > { %3231 = vmatprep.subr.mxu1 %v3664_v0 }
 0x9ed   : > { %v2244_v30 = vmul.f32 1.442695, %v2243_v29  ;;  %v2718_v29 = vld [vmem:[%s4511_s14 + $0x58] sm:$0xff] }
 0x9ee   : > { %v2408_v31 = vpop.xlane.xlu0 %2407 }
 0x9ef   : > { %3425 = vpow2.f32 %v2244_v30  ;;  %v2409_v32 = vsub.f32 %v2405_v16, %v2408_v31  ;;  %v2717_v30 = vld [vmem:[%s4511_s14 + $0x50] sm:$0xff]  ;;  %v2716_v31 = vld [vmem:[%s4511_s14 + $0x48] sm:$0xff] }
 0x9f1   : > { %v2410_v33 = vmul.f32 1.442695, %v2409_v32  ;;  %v2715_v32 = vld [vmem:[%s4511_s14 + $0x40] sm:$0xff] }
 0x9f3   : > { %3427 = vpow2.f32 %v2410_v33  ;;  %v2714_v33 = vld [vmem:[%s4511_s14 + $0x38] sm:$0xff] }
 0x9f8   : > { %v3424_v34 = vpop.eup %3423 }
 0x9f9   : > { %v2080_v35 = vsel %vm880_vm2, %v3424_v34, 0.0 }
 0x9fa   : > { %2081 = vadd.xlane.f32.xlu0 %v2080_v35  ;;  %v2712_v35 = vld [vmem:[%s4511_s14 + $0x28] sm:$0xff] }
 0x9fc   : > { %v3426_v36 = vpop.eup %3425 }
 0x9fd   : > { %v2246_v5 = vsel %vm880_vm2, %v3426_v36, 0.0 }
 0x9fe   : > { %2247 = vadd.xlane.f32.xlu1 %v2246_v5  ;;  %v2710_v5 = vld [vmem:[%s4511_s14 + $0x18] sm:$0xff] }
 0xa00   : > { %v3428_v37 = vpop.eup %3427 }
 0xa01   : > { %v2412_v38 = vsel %vm880_vm2, %v3428_v37, 0.0 }
 0xa02   : > { %2413 = vadd.xlane.f32.xlu0 %v2412_v38 }
 0xa0f   : > { %2251 = vrot.lane.b32.xlu1 %v4191_v53, %s3669_s4  ;;  %s4518_s4 = sld [smem:[#allocation37_spill]] }
 0xa13   : > { %2417 = vrot.lane.b32.xlu1 %v4191_v53, %s3671_s13  ;;  %s793_s13 = scalar_lea.vmem [#allocation11], %s3991_s28 }
 0xa14   : > { %s2845_s29 = sshll.u32 %s793_s13, 4  ;;  %s2846_s29 = int_to_ptr.vmem [resolvable:$true] %s2845_s29 }
 0xa15   : > { %s3579_s26 = scalar_lea.vmem %s2846_s29, 128 }
 0xa16   : > { %p3580_p13 = scmp.ne.s32.totalorder %s2846_s29, %s3579_s26 }
 0xa18   : > { %2085 = vrot.lane.b32.xlu0 %v4191_v53, %s3668_s1  ;;  %p3581_p5 = pnand %p3580_p13, %p4520_p0 }
 0xa1a   : > { %p3582_p9 = pneg %p3581_p5 }
 0xa1b   : > { %v1916_v39 = vpop.xlane.xlu1 %1915 }
 0xa1c   : > { %3429 = vrcp.f32 %v1916_v39 }
 0xa29   : > { %v3430_v40 = vpop.eup %3429 }
 0xa2a   : > { %v1918_v41 = vmul.f32 %v3430_v40, %v3422_v22  ;;  %v2625_v22 = vld [vmem:[#allocation10 + $0x18] sm:$0xff] }
 0xa2c   : > { %3224 = vmatmul.mubr.msk.f32.vlgmr.msra.gmra.mxu1 %vm880_vm2, %v1918_v41  ;;  %v3042_v41 = vld [vmem:[%s4512_s2] ss:$0 sm:$0xff]  ;;  %s4515_s2 = sld [smem:[#allocation35_spill]] }
 0xa2d   : > { %3233 = vmatprep.mubr.msk.f32.mxu1 %vm3665_vm0, %v3664_v0 }
 0xa83   : > { %v2082_v42 = vpop.xlane.xlu0 %2081 }
 0xa84   : > { %3431 = vrcp.f32 %v2082_v42 }
 0xa87   : > { %v2248_v43 = vpop.xlane.xlu1 %2247 }
 0xa88   : > { %3433 = vrcp.f32 %v2248_v43  ;;  %v3043_v43 = vld [vmem:[%s4513_s17] ss:$0 sm:$0xff]  ;;  %s3680_s17 = smov [#allocation11]  }
 0xa8b   : > { %v2414_v44 = vpop.xlane.xlu0 %2413  ;;  %v2252_v47 = vpop.permute.xlu1 %2251 }
 0xa8c   : > { %3435 = vrcp.f32 %v2414_v44 }
 0xa8f   : > { %v2086_v45 = vpop.permute.xlu0 %2085  ;;  %v2418_v51 = vpop.permute.xlu1 %2417 }
 0xa90   : > { %3232 = vmatpush3.msra.mxu1 %v2086_v45 }
 0xa91   : > { %v3432_v46 = vpop.eup %3431  ;;  %3241 = vmatprep.subr.mxu1 %v3664_v0 }
 0xa92   : > { %v2084_v48 = vmul.f32 %v3432_v46, %v3424_v34  ;;  %v2713_v34 = vld [vmem:[%s4511_s14 + $0x30] sm:$0xff] }
 0xa93   : > { %v2709_v46 = vld [vmem:[%s4511_s14 + $0x10] sm:$0xff] }
 0xa94   : > { %3234 = vmatmul.mubr.msk.f32.vlgmr.msra.gmra.mxu1 %vm880_vm2, %v2084_v48  ;;  %v2707_v48 = vld [vmem:[%s4511_s14] sm:$0xff] }
 0xa95   : > { %v3434_v49 = vpop.eup %3433  ;;  %3242 = vmatpush3.msra.mxu1 %v2252_v47  ;;  %3243 = vmatprep.mubr.msk.f32.mxu1 %vm3665_vm0, %v3664_v0  ;;  %v2708_v47 = vld [vmem:[%s4511_s14 + $0x8] sm:$0xff] }
 0xa96   : > { %3251 = vmatprep.subr.mxu1 %v3664_v0  ;;  %v2250_v50 = vmul.f32 %v3434_v49, %v3426_v36  ;;  %v2711_v36 = vld [vmem:[%s4511_s14 + $0x20] sm:$0xff] }
 0xa98   : > { %3244 = vmatmul.mubr.msk.f32.vlgmr.msra.gmra.mxu1 %vm880_vm2, %v2250_v50 }
 0xa99   : > { %v3436_v53 = vpop.eup %3435  ;;  %3252 = vmatpush3.msra.mxu1 %v2418_v51  ;;  %3253 = vmatprep.mubr.msk.f32.mxu1 %vm3665_vm0, %v3664_v0 }
 0xa9a   : > { %v2416_v54 = vmul.f32 %v3436_v53, %v3428_v37  ;;  %3267 = vmatprep.subr.mxu1 %v3664_v0 }
 0xa9c   : > { %3254 = vmatmul.mubr.msk.f32.vlgmr.msra.gmra.mxu1 %vm880_vm2, %v2416_v54 }
 0xa9d   : > { %3275 = vmatprep.mubr.msk.f32.mxu1 %vm3665_vm0, %v3664_v0  ;;  %3268 = vmatpush3.msra.mxu1 %v2625_v22 }
 0xa9e   : > { %3269 = vmatprep.subr.mxu1 %v3664_v0 }
 0xa9f   : > { %3270 = vmatpush3.msra.mxu1 %v2624_v23 }
 0xaa0   : > { %3271 = vmatprep.subr.mxu1 %v3664_v0 }
 0xaa1   : > { %3272 = vmatpush3.msra.mxu1 %v2623_v24 }
 0xaa2   : > { %3273 = vmatprep.subr.mxu1 %v3664_v0 }
 0xaec   : > { %v1991_v55 = vpop.f32.mrf.mxu1 }
 0xaee   : > { %v3225_v56 = vpop.f32.mrf.mxu1 }
 0xb54   : > { %v2157_v61 = vpop.f32.mrf.mxu1 }
 0xb55   : > { %2494 = vrot.lane.b32.xlu0 %v2157_v61, %s4507_s23 }
 0xb56   : > { %v3235_v62 = vpop.f32.mrf.mxu1 }
 0xb58   : > { %v2323_v63 = vpop.f32.mrf.mxu1 }
 0xb59   : > { %2498 = vrot.lane.b32.xlu1 %v2323_v63, %s4508_s16  ;;  %s4514_s16 = sld [smem:[#allocation33_spill]] }
 0xb5a   : > { %v3245_v1 = vpop.f32.mrf.mxu1 }
 0xb5c   : > { %v2489_v2 = vpop.f32.mrf.mxu1 }
 0xb5d   : > { %2502 = vrot.lane.b32.xlu0 %v2489_v2, %s4509_s18  ;;  %s4519_s18 = sld [smem:[#allocation38_spill]] }
 0xb5e   : > { %v3255_v3 = vpop.f32.mrf.mxu1 }
 0xb5f   : > { %v3044_v49 = vld [vmem:[%s4514_s16] ss:$0 sm:$0xff] }
 0xb63   : > { %s2843_s19 = scalar_lea.hbm %s4519_s18, %s3050_s0 }
 0xbc7   : > { %v2495_v4 = vpop.permute.xlu0 %2494 }
 0xbc8   : > { %v2505_v7 = vsel %vm880_vm2, %v1991_v55, %v2495_v4  ;;  %v3046_v55 = vld [vmem:[%s4515_s2] ss:$0 sm:$0xff]  ;;  %s2832_s2 = scalar_lea.sflag [#allocation4], %s3988_s21 }
 0xbcb   : > { %v2499_v6 = vpop.permute.xlu1 %2498 }
 0xbcc   : > { %v2506_v8 = vsel %vm1556_vm4, %v2505_v7, %v2499_v6  ;;  %v3047_v7 = vld [vmem:[%s4517_s12] ss:$0 sm:$0xff]  ;;  %s3583_s12 = sshll.u32 %s3680_s17, 4  ;;  %s3584_s12 = int_to_ptr.vmem [resolvable:$false] %s3583_s12 }
 0xbcd   : > { %s3585_s3 = scalar_lea.vmem %s3584_s12, 256  ;;  %p3586_p1 = scmp.lt.s32.totalorder %s2846_s29, %s3584_s12 }
 0xbce   : > { %p3587_p4 = scmp.lt.s32.totalorder %s3585_s3, %s3579_s26 }
 0xbcf   : > { %v2503_v9 = vpop.permute.xlu0 %2502 }
 0xbd0   : > { %v2507_v10 = vsel %vm1558_vm5, %v2506_v8, %v2503_v9  ;;  %v3048_v9 = vld [vmem:[%s4518_s4] ss:$0 sm:$0xff]  ;;  %p3588_p6 = por %p3587_p4, %p3586_p1 }
 0xbd1   : > { %3265 = vmatmul.mubr.msk.f32.vlgmr.msra.gmra.mxu0 %vm802_vm1, %v2507_v10 }
 0xbd2   : > { %3310 = vmatprep.mubr.msk.f32.mxu0 %vm3665_vm0, %v3664_v0  ;;  %3279 = vmatpush3.msra.mxu0 %v2722_v25  ;;  %p3589_p8 = pnand %p3588_p6, %p3582_p9 }
 0xbd3   : > { %3280 = vmatprep.subr.mxu0 %v3664_v0 }
 0xbd4   : > { %3281 = vmatpush3.msra.mxu0 %v2721_v26 }
 0xbd5   : > { %3282 = vmatprep.subr.mxu0 %v3664_v0 }
 0xbd6   : > { %3283 = vmatpush3.msra.mxu0 %v2720_v27 }
 0xbd7   : > { %3284 = vmatprep.subr.mxu0 %v3664_v0 }
 0xbd8   : > { %3285 = vmatpush3.msra.mxu0 %v2719_v28 }
 0xbd9   : > { %3286 = vmatprep.subr.mxu0 %v3664_v0 }
 0xbda   : > { %3287 = vmatpush3.msra.mxu0 %v2718_v29 }
 0xbdb   : > { %3288 = vmatprep.subr.mxu0 %v3664_v0 }
 0xbdc   : > { %3289 = vmatpush3.msra.mxu0 %v2717_v30 }
 0xbdd   : > { %3290 = vmatprep.subr.mxu0 %v3664_v0 }
 0xbde   : > { %3291 = vmatpush3.msra.mxu0 %v2716_v31 }
 0xbdf   : > { %3292 = vmatprep.subr.mxu0 %v3664_v0 }
 0xbe0   : > { %3293 = vmatpush3.msra.mxu0 %v2715_v32 }
 0xbe1   : > { %3294 = vmatprep.subr.mxu0 %v3664_v0 }
 0xbe2   : > { %3295 = vmatpush3.msra.mxu0 %v2714_v33 }
 0xbe3   : > { %3296 = vmatprep.subr.mxu0 %v3664_v0 }
 0xbe4   : > { %3297 = vmatpush3.msra.mxu0 %v2713_v34 }
 0xbe5   : > { %3298 = vmatprep.subr.mxu0 %v3664_v0 }
 0xbe6   : > { %3299 = vmatpush3.msra.mxu0 %v2712_v35 }
 0xbe7   : > { %3300 = vmatprep.subr.mxu0 %v3664_v0 }
 0xbe8   : > { %3301 = vmatpush3.msra.mxu0 %v2711_v36 }
 0xbe9   : > { %3302 = vmatprep.subr.mxu0 %v3664_v0 }
 0xbea   : > { %3303 = vmatpush3.msra.mxu0 %v2710_v5 }
 0xbeb   : > { %3304 = vmatprep.subr.mxu0 %v3664_v0 }
 0xbec   : > { %3305 = vmatpush3.msra.mxu0 %v2709_v46 }
 0xbed   : > { %3306 = vmatprep.subr.mxu0 %v3664_v0 }
 0xbee   : > { %3307 = vmatpush3.msra.mxu0 %v2708_v47 }
 0xbef   : > { %3308 = vmatprep.subr.mxu0 %v3664_v0 }
 0xbf0   : > { %3309 = vmatpush3.msra.mxu0 %v2707_v48 }
 0xc91   : > { %v2588_v12 = vpop.f32.mrf.mxu0 }
 0xc92   : > { %v2589_v13 = vadd.f32 %v3040_v11, %v2588_v12 }
 0xc93   : > { %v3266_v14 = vpop.f32.mrf.mxu0 }
 0xc94   : > { %v2592_v15 = vadd.f32 %v2589_v13, %v4185_v52  ;;  %v2622_v52 = vld [vmem:[#allocation10] sm:$0xff] }
 0xc95   : > { %3274 = vmatpush3.msra.mxu1 %v2622_v52 }
 0xc96   : > { %v2593_v16 = vsel %vm802_vm1, %v2592_v15, 0.0 }
 0xc97   : > { %2594 = vadd.xlane.f32.xlu1 %v2593_v16 }
 0xd20   : > { %v2595_v17 = vpop.xlane.xlu1 %2594 }
 0xd21   : > { %v2596_v18 = vmul.f32 0.03125, %v2595_v17 }
 0xd23   : > { %v2597_v19 = vsub.f32 %v2592_v15, %v2596_v18 }
 0xd25   : > { %v2598_v20 = vmul.f32 %v2597_v19, %v2597_v19 }
 0xd27   : > { %v2599_v21 = vsel %vm802_vm1, %v2598_v20, 0.0 }
 0xd28   : > { %2600 = vadd.xlane.f32.xlu0 %v2599_v21 }
 0xdb1   : > { %v2601_v37 = vpop.xlane.xlu0 %2600 }
 0xdb2   : > { %v2602_v38 = vmul.f32 0.03125, %v2601_v37 }
 0xdb4   : > { %v2603_v39 = vadd.f32 1e-05, %v2602_v38 }
 0xdb6   : > { %3437 = vrsqrt.f32 %v2603_v39 }
 0xdc3   : > { %v3438_v40 = vpop.eup %3437 }
 0xdc4   : > { %v2605_v42 = vmul.f32 %v3438_v40, %v2597_v19 }
 0xdc6   : > { %v2613_v44 = vmul.f32 %v3042_v41, %v2605_v42 }
 0xdc8   : > { %v2621_v45 = vadd.f32 %v3043_v43, %v2613_v44 }
 0xdca   : > { %3276 = vmatmul.mubr.msk.f32.vlgmr.msra.gmra.mxu1 %vm802_vm1, %v2621_v45 }
 0xe8a   : > { %v2702_v50 = vpop.f32.mrf.mxu1 }
 0xe8b   : > { %v2703_v51 = vadd.f32 %v3044_v49, %v2702_v50 }
 0xe8c   : > { %v3277_v53 = vpop.f32.mrf.mxu1 }
 0xe8d   : > { %v2706_v54 = vmax.f32 %v2703_v51, 0.0 }
 0xe8f   : > { %3311 = vmatmul.mubr.f32.vlgmr.msra.gmra.mxu0 %v2706_v54 }
 0xf4f   : > { %v2796_v56 = vpop.f32.mrf.mxu0 }
 0xf50   : > { %v2797_v57 = vadd.f32 %v3046_v55, %v2796_v56 }
 0xf51   : > { %v3312_v58 = vpop.f32.mrf.mxu0 }
 0xf52   : > { %v2800_v59 = vadd.f32 %v2797_v57, %v2621_v45 }
 0xf54   : > { %v2801_v0 = vsel %vm802_vm1, %v2800_v59, 0.0 }
 0xf55   : > { %2802 = vadd.xlane.f32.xlu0 %v2801_v0 }
 0xfde   : > { %v2803_v60 = vpop.xlane.xlu0 %2802 }
 0xfdf   : > { %v2804_v61 = vmul.f32 0.03125, %v2803_v60 }
 0xfe1   : > { %v2805_v62 = vsub.f32 %v2800_v59, %v2804_v61 }
 0xfe3   : > { %v2806_v63 = vmul.f32 %v2805_v62, %v2805_v62 }
 0xfe5   : > { %v2807_v1 = vsel %vm802_vm1, %v2806_v63, 0.0 }
 0xfe6   : > { %2808 = vadd.xlane.f32.xlu1 %v2807_v1 }
0x106f   : > { %v2809_v2 = vpop.xlane.xlu1 %2808 }
0x1070   : > { %v2810_v3 = vmul.f32 0.03125, %v2809_v2 }
0x1072   : > { %v2811_v4 = vadd.f32 1e-05, %v2810_v3 }
0x1074   : > { %3439 = vrsqrt.f32 %v2811_v4 }
0x1081   : > { %v3440_v6 = vpop.eup %3439 }
0x1082   : > { %v2813_v8 = vmul.f32 %v3440_v6, %v2805_v62 }
0x1084   : > { %v2821_v10 = vmul.f32 %v3047_v7, %v2813_v8 }
0x1086   : > { %v2829_v11 = vadd.f32 %v3048_v9, %v2821_v10 }
0x1088   : > { %2830 = vst.msk [vmem:[%s793_s13] sm:$0xff] %vm802_vm1, %v2829_v11 }
0x1089   : > { %3592 = shalt.err (!%p3589_p8)
}
0x108a   : > { %s3593_s28 = scalar_lea.hbm %s2843_s19, 128  ;;  %s3597_s1 = scalar_lea.hbm %s4519_s18, 256 }
0x108b   : > { %p3594_p3 = scmp.ne.s32.totalorder %s2843_s19, %s3593_s28  ;;  %p3598_p7 = scmp.lt.s32.totalorder %s2843_s19, %s4519_s18 }
0x108c   : > { %p3599_p11 = scmp.lt.s32.totalorder %s3597_s1, %s3593_s28 }
0x108d   : > { %p3595_p2 = pnand %p3594_p3, %p4520_p0 }
0x108e   : > { %p3600_p12 = por %p3599_p11, %p3598_p7 }
0x108f   : > { %p3596_p10 = pneg %p3595_p2 }
0x1091   : > { %p3601_p13 = pnand %p3600_p12, %p3596_p10 }
0x1093   : > { %3604 = shalt.err (!%p3601_p13)
}
0x1094   : > { %3325 = dma.vmem_to_hbm [thread:$0]  (%p4520_p0), %s2846_s29, 128, %s2843_s19, %s2832_s2  }
0x1095 PF: > { %s4521_s13 = sld [smem:[#allocation17_spill]]  ;;  %p4524_p9 = scmp.ge.s32.totalorder %s3655_s27, 2 }
0x1096   : > { %s4522_s23 = sld [smem:[#allocation19_spill]] }
0x109b   : > { %s2857_s16 = sand.u32 1, %s4521_s13  }
0x109c   : > { %p4523_p5 = scmp.ne.s32.totalorder %s4522_s23, 0  ;;  %s2858_s26 = scalar_lea.sflag [#allocation4], %s2857_s16 }
0x109e   : > { %p3345_p1 = pnand %p4524_p9, %p4523_p5 }
0x10a0   : > { %p3346_p4 = pneg %p3345_p1 }
0x10a2   : > { %3638 = dma.done.wait (%p3346_p4), %s2858_s26, 128  }
0x10a3   : > { %3640 = vsyncadd (%p3346_p4), %s2858_s26, 4294967168  ;;  %s4525_s27 = sld [smem:[#allocation20_spill]]  ;;  %s4528_s2 = smov %s3647_s25 }
0x10a4   : > { %s4526_s17 = sld [smem:[#allocation18_spill]] }
0x10a5   : > { %s4527_s26 = sld [smem:[#allocation21_spill]] }
0x10a9   : > { %p40_p6 = scmp.ge.s32.totalorder %s4525_s27, 4  }
0x10aa   : > { %s4529_s25 = smov %s4526_s17 }
0x10ab   :  { %42 = sbr.rel (!%p40_p6) target bundleno = 26 (0x1a), region = 190 }
0x10b0   :  { %2863 = vsyncpa [#allocation3], 1 }
0x10b1   :  { %2865 = vsyncpa [#allocation3 + $0x1], 1 }
0x10b2   :  { %2866 = vsyncpa [#allocation6], 1 }
0x10b3   :  { %2868 = vsyncpa [#allocation6 + $0x1], 1 }
0x10b4   :  { %2869 = vsyncpa [#allocation9], 1 }
0x10b5   :  { %2871 = vsyncpa [#allocation9 + $0x1], 1 }
0x10b6   :  { %2872 = vsyncpa [#allocation4], 1 }
0x10b7   :  { %2874 = vsyncpa [#allocation4 + $0x1], 1 }

</bundles_post_ra>
